<compile_context>
chip_gen: v7x
topology: tpu7x:2x2x1
jax: 0.10.0
libtpu: 0.0.40
codegen_flags: <defaults>
</compile_context>

<pallas_src>
import functools

import jax
import jax.numpy as jnp
from jax import lax
from jax.experimental import pallas as pl
from jax.experimental.pallas import tpu as pltpu


def _round_up(x, m):
    return (x + m - 1) // m * m


# ----------------------------------------------------------------------------
# Fused kernel: LSTM recurrence + max-pool over time + decoder epilogue
# ----------------------------------------------------------------------------
def _lstm_fused_kernel(xp_ref, wh_ref, w1_ref, b1_ref, w2_ref, b2_ref,
                       out_ref, h_scr, c_scr, m_scr, *, seq_len, t_blk):
    tb = pl.program_id(1)                       # time-block index (axis 1)

    @pl.when(tb == 0)
    def _():
        h_scr[...] = jnp.zeros_like(h_scr)
        c_scr[...] = jnp.zeros_like(c_scr)
        m_scr[...] = jnp.full_like(m_scr, -jnp.inf)

    wh = wh_ref[...]                            # (4, H, H) bf16, hoisted out of the loop

    def step(s, carry):
        h, c, m = carry                         # f32 (Bt, H), carried in vregs
        xs = xp_ref[s]                          # (4, Bt, H) f32 = X@Wx + bh (precomputed)
        hb = h.astype(jnp.bfloat16)
        # Gate-major layout: four (Bt,H)@(H,H) bf16 MXU dots, no lane-offset slicing.
        i_pre = xs[0] + jnp.dot(hb, wh[0], preferred_element_type=jnp.float32)
        f_pre = xs[1] + jnp.dot(hb, wh[1], preferred_element_type=jnp.float32)
        o_pre = xs[2] + jnp.dot(hb, wh[2], preferred_element_type=jnp.float32)
        g_pre = xs[3] + jnp.dot(hb, wh[3], preferred_element_type=jnp.float32)
        i_g = jax.nn.sigmoid(i_pre)
        f_g = jax.nn.sigmoid(f_pre)
        o_g = jax.nn.sigmoid(o_pre)
        c_t = jnp.tanh(g_pre)
        c_new = f_g * c + i_g * c_t
        h_new = o_g * jnp.tanh(c_new)
        # Mask padded time steps (keeps state/pooled max unchanged past seq_len).
        valid = (tb * t_blk + s) < seq_len
        h_new = jnp.where(valid, h_new, h)
        c_new = jnp.where(valid, c_new, c)
        m_new = jnp.maximum(m, h_new)
        return h_new, c_new, m_new

    h, c, m = lax.fori_loop(0, t_blk, step,
                            (h_scr[...], c_scr[...], m_scr[...]),
                            unroll=True)
    h_scr[...] = h
    c_scr[...] = c
    m_scr[...] = m

    @pl.when(tb == pl.num_programs(1) - 1)
    def _():
        # decoder: ReLU -> Linear(H, H//2) -> (Dropout = identity, eval) -> Linear
        pooled = jnp.maximum(m_scr[...], 0.0)
        z = jnp.dot(pooled, w1_ref[...], preferred_element_type=jnp.float32) + b1_ref[...]
        out_ref[...] = (jnp.dot(z, w2_ref[...], preferred_element_type=jnp.float32)
                        + b2_ref[...])


# ----------------------------------------------------------------------------
# Forward pass wrapper (embedding lookup + input projection are glue JAX)
# ----------------------------------------------------------------------------
def lstm_forward(token_ids, params, *, t_blk=None):
    B, S = token_ids.shape
    emb_tbl = params["emb"]
    E = emb_tbl.shape[1]
    H = params["wh"].shape[0]
    H2 = params["w1"].shape[1]
    L = params["w2"].shape[1]

    if t_blk is None:
        t_blk = min(32, S)
    nt = pl.cdiv(S, t_blk)
    s_pad = nt * t_blk

    # --- embedding gather, time-major (S, B, E); pad batch to sublane multiple ---
    emb = jnp.take(emb_tbl, token_ids.T, axis=0).astype(jnp.float32)
    b_pad = _round_up(B, 8)
    b_tile = b_pad if b_pad <= 128 else 128
    b_pad = _round_up(b_pad, b_tile)
    nb = b_pad // b_tile
    emb = jnp.pad(emb, ((0, 0), (0, b_pad - B), (0, 0)))

    # --- hoisted input projection: X @ Wx + bh for the whole sequence ---
    # gate-major (S, 4, B, H): one large MXU-efficient matmul, bf16 operands, f32 acc.
    wx_r = params["wx"].reshape(E, 4, H).astype(jnp.bfloat16)
    bh_r = params["bh"].reshape(4, H).astype(jnp.float32)
    xproj = jnp.einsum("sbe,egh->sgbh", emb.astype(jnp.bfloat16), wx_r,
                       preferred_element_type=jnp.float32)
    xproj = xproj + bh_r[None, :, None, :]
    xproj = jnp.pad(xproj, ((0, s_pad - S), (0, 0), (0, 0), (0, 0)))

    # --- recurrent weights, gate-major (4, H, H), bf16 MXU operands ---
    wh_r = params["wh"].reshape(H, 4, H).transpose(1, 0, 2).astype(jnp.bfloat16)

    # --- decoder weights; final output written as a lane-dense 128-wide slab ---
    l_out = _round_up(L, 128)
    w1 = params["w1"].astype(jnp.float32)
    b1 = params["b1"].astype(jnp.float32)
    w2p = jnp.zeros((H2, l_out), jnp.float32).at[:, :L].set(params["w2"])
    b2p = jnp.zeros((1, l_out), jnp.float32).at[:, :L].set(params["b2"])

    kern = functools.partial(_lstm_fused_kernel, seq_len=S, t_blk=t_blk)
    out = pl.pallas_call(
        kern,
        out_shape=jax.ShapeDtypeStruct((b_pad, l_out), jnp.float32),
        grid_spec=pltpu.PrefetchScalarGridSpec(
            num_scalar_prefetch=0,
            grid=(nb, nt),                      # (batch tiles, time blocks)
            in_specs=[
                pl.BlockSpec((t_blk, 4, b_tile, H), lambda b, t: (t, 0, b, 0)),
                pl.BlockSpec((4, H, H), lambda b, t: (0, 0, 0)),
                pl.BlockSpec((H, H2), lambda b, t: (0, 0)),
                pl.BlockSpec((1, H2), lambda b, t: (0, 0)),
                pl.BlockSpec((H2, l_out), lambda b, t: (0, 0)),
                pl.BlockSpec((1, l_out), lambda b, t: (0, 0)),
            ],
            out_specs=pl.BlockSpec((b_tile, l_out), lambda b, t: (b, 0)),
            scratch_shapes=[pltpu.VMEM((b_tile, H), jnp.float32)] * 3,
        ),
        compiler_params=pltpu.CompilerParams(
            dimension_semantics=("parallel", "arbitrary")),
    )(xproj, wh_r, w1, b1, w2p, b2p)
    return out[:B, :L]


# ----------------------------------------------------------------------------
# Pure-JAX f32 reference for validation (matches the PyTorch forward)
# ----------------------------------------------------------------------------
def lstm_reference(token_ids, params, num_hiddens):
    H = num_hiddens
    emb = jnp.take(params["emb"], token_ids.T, axis=0).astype(jnp.float32)
    S, B, _ = emb.shape
    h = jnp.zeros((B, H), jnp.float32)
    c = jnp.zeros((B, H), jnp.float32)
    hs = []
    for t in range(S):
        ifoc = emb[t] @ params["wx"] + h @ params["wh"] + params["bh"]
        gates = jax.nn.sigmoid(ifoc[:, :3 * H])
        i_g, f_g, o_g = gates[:, :H], gates[:, H:2 * H], gates[:, 2 * H:3 * H]
        c_tilda = jnp.tanh(ifoc[:, 3 * H:])
        c = f_g * c + i_g * c_tilda
        h = o_g * jnp.tanh(c)
        hs.append(h)
    pooled = jnp.max(jnp.stack(hs, axis=0), axis=0)  # max_pool1d over time
    z = jnp.maximum(pooled, 0.0) @ params["w1"] + params["b1"]
    return z @ params["w2"] + params["b2"]


# ----------------------------------------------------------------------------
if __name__ == "__main__":
    vocab_size = 50
    embed_size = 16
    num_hiddens = 32
    label_size = 4
    batch = 2
    seq = 8

    key = jax.random.PRNGKey(0)
    ks = jax.random.split(key, 8)

    params = {
        "emb": 0.1 * jax.random.normal(ks[0], (vocab_size, embed_size), jnp.float32),
        "wx":  0.1 * jax.random.normal(ks[1], (embed_size, 4 * num_hiddens), jnp.float32),
        "wh":  0.1 * jax.random.normal(ks[2], (num_hiddens, 4 * num_hiddens), jnp.float32),
        "bh":  0.1 * jax.random.normal(ks[3], (1, 4 * num_hiddens), jnp.float32),
        "w1":  0.1 * jax.random.normal(ks[4], (num_hiddens, num_hiddens // 2), jnp.float32),
        "b1":  0.1 * jax.random.normal(ks[5], (1, num_hiddens // 2), jnp.float32),
        "w2":  0.1 * jax.random.normal(ks[6], (num_hiddens // 2, label_size), jnp.float32),
        "b2":  0.1 * jax.random.normal(ks[7], (1, label_size), jnp.float32),
    }

    token_ids = jax.random.randint(jax.random.PRNGKey(1), (batch, seq), 0, vocab_size)

    out = jax.block_until_ready(lstm_forward(token_ids, params))
    ref = jax.block_until_ready(lstm_reference(token_ids, params, num_hiddens))

    assert out.shape == (batch, label_size)
    # bf16 MXU operands (f32 accumulation) -> loosened tolerance vs f32 reference.
    assert jnp.allclose(out, ref, atol=2e-2, rtol=2e-2), (out, ref)
    print("KERNEL_OK")
</pallas_src>

<mosaic_0001>
module attributes {stable_mosaic.version = 11 : i64} {
  func.func @_lstm_fused_kernel(%arg0: i32, %arg1: i32, %arg2: memref<8x4x8x32xf32, #tpu.memory_space<vmem>>, %arg3: memref<4x32x32xbf16, #tpu.memory_space<vmem>>, %arg4: memref<32x16xf32, #tpu.memory_space<vmem>>, %arg5: memref<1x16xf32, #tpu.memory_space<vmem>>, %arg6: memref<16x128xf32, #tpu.memory_space<vmem>>, %arg7: memref<1x128xf32, #tpu.memory_space<vmem>>, %arg8: memref<8x128xf32, #tpu.memory_space<vmem>>, %arg9: memref<8x32xf32, #tpu.memory_space<vmem>>, %arg10: memref<8x32xf32, #tpu.memory_space<vmem>>, %arg11: memref<8x32xf32, #tpu.memory_space<vmem>>) attributes {dimension_semantics = [#tpu.dimension_semantics<parallel>, #tpu.dimension_semantics<arbitrary>], iteration_bounds = array<i64: 1, 1>, scalar_prefetch = 0 : i64, scratch_operands = 3 : i64, tpu.core_type = #tpu.core_type<tc>, window_params = [{transform_indices = @transform_0, window_bounds = array<i64: 8, 4, 8, 32>}, {pipeline_mode = #tpu.pipeline_mode<synchronous>, transform_indices = @transform_1, window_bounds = array<i64: 4, 32, 32>}, {pipeline_mode = #tpu.pipeline_mode<synchronous>, transform_indices = @transform_2, window_bounds = array<i64: 32, 16>}, {pipeline_mode = #tpu.pipeline_mode<synchronous>, transform_indices = @transform_3, window_bounds = array<i64: 1, 16>}, {pipeline_mode = #tpu.pipeline_mode<synchronous>, transform_indices = @transform_4, window_bounds = array<i64: 16, 128>}, {pipeline_mode = #tpu.pipeline_mode<synchronous>, transform_indices = @transform_5, window_bounds = array<i64: 1, 128>}, {transform_indices = @transform_6, window_bounds = array<i64: 8, 128>}]} {
    %c0_i32 = arith.constant 0 : i32
    %0 = arith.cmpi eq, %arg1, %c0_i32 : i32
    %1 = arith.extui %0 : i1 to i32
    %c0_i32_0 = arith.constant 0 : i32
    %2 = arith.cmpi ne, %1, %c0_i32_0 : i32
    scf.if %2 {
      %cst_113 = arith.constant 0.000000e+00 : f32
      %453 = vector.broadcast %cst_113 : f32 to vector<8x32xf32>
      %c0_114 = arith.constant 0 : index
      %c0_115 = arith.constant 0 : index
      %454 = vector.load %arg9[%c0_114, %c0_115] : memref<8x32xf32, #tpu.memory_space<vmem>>, vector<8x32xf32>
      tpu.vector_store %arg9[%c0_114, %c0_115], %453 {strides = array<i32>} : memref<8x32xf32, #tpu.memory_space<vmem>>, vector<8x32xf32>,
      %cst_116 = arith.constant 0.000000e+00 : f32
      %455 = vector.broadcast %cst_116 : f32 to vector<8x32xf32>
      %c0_117 = arith.constant 0 : index
      %c0_118 = arith.constant 0 : index
      %456 = vector.load %arg10[%c0_117, %c0_118] : memref<8x32xf32, #tpu.memory_space<vmem>>, vector<8x32xf32>
      tpu.vector_store %arg10[%c0_117, %c0_118], %455 {strides = array<i32>} : memref<8x32xf32, #tpu.memory_space<vmem>>, vector<8x32xf32>,
      %cst_119 = arith.constant 0xFF800000 : f32
      %457 = vector.broadcast %cst_119 : f32 to vector<8x32xf32>
      %c0_120 = arith.constant 0 : index
      %c0_121 = arith.constant 0 : index
      %458 = vector.load %arg11[%c0_120, %c0_121] : memref<8x32xf32, #tpu.memory_space<vmem>>, vector<8x32xf32>
      tpu.vector_store %arg11[%c0_120, %c0_121], %457 {strides = array<i32>} : memref<8x32xf32, #tpu.memory_space<vmem>>, vector<8x32xf32>,
    } else {
    }
    %c0 = arith.constant 0 : index
    %c0_1 = arith.constant 0 : index
    %c0_2 = arith.constant 0 : index
    %3 = vector.load %arg3[%c0, %c0_1, %c0_2] : memref<4x32x32xbf16, #tpu.memory_space<vmem>>, vector<4x32x32xbf16>
    %c0_3 = arith.constant 0 : index
    %c0_4 = arith.constant 0 : index
    %4 = vector.load %arg9[%c0_3, %c0_4] : memref<8x32xf32, #tpu.memory_space<vmem>>, vector<8x32xf32>
    %c0_5 = arith.constant 0 : index
    %c0_6 = arith.constant 0 : index
    %5 = vector.load %arg10[%c0_5, %c0_6] : memref<8x32xf32, #tpu.memory_space<vmem>>, vector<8x32xf32>
    %c0_7 = arith.constant 0 : index
    %c0_8 = arith.constant 0 : index
    %6 = vector.load %arg11[%c0_7, %c0_8] : memref<8x32xf32, #tpu.memory_space<vmem>>, vector<8x32xf32>
    %c0_i32_9 = arith.constant 0 : i32
    %7 = arith.index_cast %c0_i32_9 : i32 to index
    %c0_10 = arith.constant 0 : index
    %c0_11 = arith.constant 0 : index
    %c0_12 = arith.constant 0 : index
    %8 = vector.load %arg2[%7, %c0_10, %c0_11, %c0_12] : memref<8x4x8x32xf32, #tpu.memory_space<vmem>>, vector<1x4x8x32xf32>
    %9 = vector.shape_cast %8 : vector<1x4x8x32xf32> to vector<4x8x32xf32>
    %10 = arith.truncf %4 : vector<8x32xf32> to vector<8x32xbf16>
    %11 = vector.extract_strided_slice %9 {offsets = [0, 0, 0], sizes = [1, 8, 32], strides = [1, 1, 1]} : vector<4x8x32xf32> to vector<1x8x32xf32>
    %12 = vector.shape_cast %11 : vector<1x8x32xf32> to vector<8x32xf32>
    %13 = vector.extract_strided_slice %3 {offsets = [0, 0, 0], sizes = [1, 32, 32], strides = [1, 1, 1]} : vector<4x32x32xbf16> to vector<1x32x32xbf16>
    %14 = vector.shape_cast %13 : vector<1x32x32xbf16> to vector<32x32xbf16>
    %cst = arith.constant dense<0.000000e+00> : vector<8x32xf32>
    %15 = tpu.matmul %10, %14, %cst {dimension_numbers = #tpu.dot_dimension_numbers<[1], [0], [0], [1], [0, 0, 1, 1], [], []>} : vector<8x32xbf16>, vector<32x32xbf16>, vector<8x32xf32> -> vector<8x32xf32>
    %16 = arith.addf %12, %15 : vector<8x32xf32>
    %17 = vector.extract_strided_slice %9 {offsets = [1, 0, 0], sizes = [1, 8, 32], strides = [1, 1, 1]} : vector<4x8x32xf32> to vector<1x8x32xf32>
    %18 = vector.shape_cast %17 : vector<1x8x32xf32> to vector<8x32xf32>
    %19 = vector.extract_strided_slice %3 {offsets = [1, 0, 0], sizes = [1, 32, 32], strides = [1, 1, 1]} : vector<4x32x32xbf16> to vector<1x32x32xbf16>
    %20 = vector.shape_cast %19 : vector<1x32x32xbf16> to vector<32x32xbf16>
    %cst_13 = arith.constant dense<0.000000e+00> : vector<8x32xf32>
    %21 = tpu.matmul %10, %20, %cst_13 {dimension_numbers = #tpu.dot_dimension_numbers<[1], [0], [0], [1], [0, 0, 1, 1], [], []>} : vector<8x32xbf16>, vector<32x32xbf16>, vector<8x32xf32> -> vector<8x32xf32>
    %22 = arith.addf %18, %21 : vector<8x32xf32>
    %23 = vector.extract_strided_slice %9 {offsets = [2, 0, 0], sizes = [1, 8, 32], strides = [1, 1, 1]} : vector<4x8x32xf32> to vector<1x8x32xf32>
    %24 = vector.shape_cast %23 : vector<1x8x32xf32> to vector<8x32xf32>
    %25 = vector.extract_strided_slice %3 {offsets = [2, 0, 0], sizes = [1, 32, 32], strides = [1, 1, 1]} : vector<4x32x32xbf16> to vector<1x32x32xbf16>
    %26 = vector.shape_cast %25 : vector<1x32x32xbf16> to vector<32x32xbf16>
    %cst_14 = arith.constant dense<0.000000e+00> : vector<8x32xf32>
    %27 = tpu.matmul %10, %26, %cst_14 {dimension_numbers = #tpu.dot_dimension_numbers<[1], [0], [0], [1], [0, 0, 1, 1], [], []>} : vector<8x32xbf16>, vector<32x32xbf16>, vector<8x32xf32> -> vector<8x32xf32>
    %28 = arith.addf %24, %27 : vector<8x32xf32>
    %29 = vector.extract_strided_slice %9 {offsets = [3, 0, 0], sizes = [1, 8, 32], strides = [1, 1, 1]} : vector<4x8x32xf32> to vector<1x8x32xf32>
    %30 = vector.shape_cast %29 : vector<1x8x32xf32> to vector<8x32xf32>
    %31 = vector.extract_strided_slice %3 {offsets = [3, 0, 0], sizes = [1, 32, 32], strides = [1, 1, 1]} : vector<4x32x32xbf16> to vector<1x32x32xbf16>
    %32 = vector.shape_cast %31 : vector<1x32x32xbf16> to vector<32x32xbf16>
    %cst_15 = arith.constant dense<0.000000e+00> : vector<8x32xf32>
    %33 = tpu.matmul %10, %32, %cst_15 {dimension_numbers = #tpu.dot_dimension_numbers<[1], [0], [0], [1], [0, 0, 1, 1], [], []>} : vector<8x32xbf16>, vector<32x32xbf16>, vector<8x32xf32> -> vector<8x32xf32>
    %34 = arith.addf %30, %33 : vector<8x32xf32>
    %35 = arith.negf %16 : vector<8x32xf32>
    %36 = math.exp %35 : vector<8x32xf32>
    %cst_16 = arith.constant 1.000000e+00 : f32
    %37 = vector.broadcast %cst_16 : f32 to vector<8x32xf32>
    %38 = arith.addf %37, %36 : vector<8x32xf32>
    %39 = arith.divf %37, %38 : vector<8x32xf32>
    %40 = arith.negf %22 : vector<8x32xf32>
    %41 = math.exp %40 : vector<8x32xf32>
    %cst_17 = arith.constant 1.000000e+00 : f32
    %42 = vector.broadcast %cst_17 : f32 to vector<8x32xf32>
    %43 = arith.addf %42, %41 : vector<8x32xf32>
    %44 = arith.divf %42, %43 : vector<8x32xf32>
    %45 = arith.negf %28 : vector<8x32xf32>
    %46 = math.exp %45 : vector<8x32xf32>
    %cst_18 = arith.constant 1.000000e+00 : f32
    %47 = vector.broadcast %cst_18 : f32 to vector<8x32xf32>
    %48 = arith.addf %47, %46 : vector<8x32xf32>
    %49 = arith.divf %47, %48 : vector<8x32xf32>
    %50 = math.tanh %34 : vector<8x32xf32>
    %51 = arith.mulf %44, %5 : vector<8x32xf32>
    %52 = arith.mulf %39, %50 : vector<8x32xf32>
    %53 = arith.addf %51, %52 : vector<8x32xf32>
    %54 = math.tanh %53 : vector<8x32xf32>
    %55 = arith.mulf %49, %54 : vector<8x32xf32>
    %c8_i32 = arith.constant 8 : i32
    %56 = arith.muli %arg1, %c8_i32 : i32
    %57 = arith.addi %56, %c0_i32_9 : i32
    %c8_i32_19 = arith.constant 8 : i32
    %58 = arith.cmpi slt, %57, %c8_i32_19 : i32
    %59 = arith.select %58, %55, %4 : vector<8x32xf32>
    %60 = arith.select %58, %53, %5 : vector<8x32xf32>
    %61 = arith.maximumf %6, %59 : vector<8x32xf32>
    %c1_i32 = arith.constant 1 : i32
    %62 = arith.index_cast %c1_i32 : i32 to index
    %c0_20 = arith.constant 0 : index
    %c0_21 = arith.constant 0 : index
    %c0_22 = arith.constant 0 : index
    %63 = vector.load %arg2[%62, %c0_20, %c0_21, %c0_22] : memref<8x4x8x32xf32, #tpu.memory_space<vmem>>, vector<1x4x8x32xf32>
    %64 = vector.shape_cast %63 : vector<1x4x8x32xf32> to vector<4x8x32xf32>
    %65 = arith.truncf %59 : vector<8x32xf32> to vector<8x32xbf16>
    %66 = vector.extract_strided_slice %64 {offsets = [0, 0, 0], sizes = [1, 8, 32], strides = [1, 1, 1]} : vector<4x8x32xf32> to vector<1x8x32xf32>
    %67 = vector.shape_cast %66 : vector<1x8x32xf32> to vector<8x32xf32>
    %68 = vector.extract_strided_slice %3 {offsets = [0, 0, 0], sizes = [1, 32, 32], strides = [1, 1, 1]} : vector<4x32x32xbf16> to vector<1x32x32xbf16>
    %69 = vector.shape_cast %68 : vector<1x32x32xbf16> to vector<32x32xbf16>
    %cst_23 = arith.constant dense<0.000000e+00> : vector<8x32xf32>
    %70 = tpu.matmul %65, %69, %cst_23 {dimension_numbers = #tpu.dot_dimension_numbers<[1], [0], [0], [1], [0, 0, 1, 1], [], []>} : vector<8x32xbf16>, vector<32x32xbf16>, vector<8x32xf32> -> vector<8x32xf32>
    %71 = arith.addf %67, %70 : vector<8x32xf32>
    %72 = vector.extract_strided_slice %64 {offsets = [1, 0, 0], sizes = [1, 8, 32], strides = [1, 1, 1]} : vector<4x8x32xf32> to vector<1x8x32xf32>
    %73 = vector.shape_cast %72 : vector<1x8x32xf32> to vector<8x32xf32>
    %74 = vector.extract_strided_slice %3 {offsets = [1, 0, 0], sizes = [1, 32, 32], strides = [1, 1, 1]} : vector<4x32x32xbf16> to vector<1x32x32xbf16>
    %75 = vector.shape_cast %74 : vector<1x32x32xbf16> to vector<32x32xbf16>
    %cst_24 = arith.constant dense<0.000000e+00> : vector<8x32xf32>
    %76 = tpu.matmul %65, %75, %cst_24 {dimension_numbers = #tpu.dot_dimension_numbers<[1], [0], [0], [1], [0, 0, 1, 1], [], []>} : vector<8x32xbf16>, vector<32x32xbf16>, vector<8x32xf32> -> vector<8x32xf32>
    %77 = arith.addf %73, %76 : vector<8x32xf32>
    %78 = vector.extract_strided_slice %64 {offsets = [2, 0, 0], sizes = [1, 8, 32], strides = [1, 1, 1]} : vector<4x8x32xf32> to vector<1x8x32xf32>
    %79 = vector.shape_cast %78 : vector<1x8x32xf32> to vector<8x32xf32>
    %80 = vector.extract_strided_slice %3 {offsets = [2, 0, 0], sizes = [1, 32, 32], strides = [1, 1, 1]} : vector<4x32x32xbf16> to vector<1x32x32xbf16>
    %81 = vector.shape_cast %80 : vector<1x32x32xbf16> to vector<32x32xbf16>
    %cst_25 = arith.constant dense<0.000000e+00> : vector<8x32xf32>
    %82 = tpu.matmul %65, %81, %cst_25 {dimension_numbers = #tpu.dot_dimension_numbers<[1], [0], [0], [1], [0, 0, 1, 1], [], []>} : vector<8x32xbf16>, vector<32x32xbf16>, vector<8x32xf32> -> vector<8x32xf32>
    %83 = arith.addf %79, %82 : vector<8x32xf32>
    %84 = vector.extract_strided_slice %64 {offsets = [3, 0, 0], sizes = [1, 8, 32], strides = [1, 1, 1]} : vector<4x8x32xf32> to vector<1x8x32xf32>
    %85 = vector.shape_cast %84 : vector<1x8x32xf32> to vector<8x32xf32>
    %86 = vector.extract_strided_slice %3 {offsets = [3, 0, 0], sizes = [1, 32, 32], strides = [1, 1, 1]} : vector<4x32x32xbf16> to vector<1x32x32xbf16>
    %87 = vector.shape_cast %86 : vector<1x32x32xbf16> to vector<32x32xbf16>
    %cst_26 = arith.constant dense<0.000000e+00> : vector<8x32xf32>
    %88 = tpu.matmul %65, %87, %cst_26 {dimension_numbers = #tpu.dot_dimension_numbers<[1], [0], [0], [1], [0, 0, 1, 1], [], []>} : vector<8x32xbf16>, vector<32x32xbf16>, vector<8x32xf32> -> vector<8x32xf32>
    %89 = arith.addf %85, %88 : vector<8x32xf32>
    %90 = arith.negf %71 : vector<8x32xf32>
    %91 = math.exp %90 : vector<8x32xf32>
    %cst_27 = arith.constant 1.000000e+00 : f32
    %92 = vector.broadcast %cst_27 : f32 to vector<8x32xf32>
    %93 = arith.addf %92, %91 : vector<8x32xf32>
    %94 = arith.divf %92, %93 : vector<8x32xf32>
    %95 = arith.negf %77 : vector<8x32xf32>
    %96 = math.exp %95 : vector<8x32xf32>
    %cst_28 = arith.constant 1.000000e+00 : f32
    %97 = vector.broadcast %cst_28 : f32 to vector<8x32xf32>
    %98 = arith.addf %97, %96 : vector<8x32xf32>
    %99 = arith.divf %97, %98 : vector<8x32xf32>
    %100 = arith.negf %83 : vector<8x32xf32>
    %101 = math.exp %100 : vector<8x32xf32>
    %cst_29 = arith.constant 1.000000e+00 : f32
    %102 = vector.broadcast %cst_29 : f32 to vector<8x32xf32>
    %103 = arith.addf %102, %101 : vector<8x32xf32>
    %104 = arith.divf %102, %103 : vector<8x32xf32>
    %105 = math.tanh %89 : vector<8x32xf32>
    %106 = arith.mulf %99, %60 : vector<8x32xf32>
    %107 = arith.mulf %94, %105 : vector<8x32xf32>
    %108 = arith.addf %106, %107 : vector<8x32xf32>
    %109 = math.tanh %108 : vector<8x32xf32>
    %110 = arith.mulf %104, %109 : vector<8x32xf32>
    %c8_i32_30 = arith.constant 8 : i32
    %111 = arith.muli %arg1, %c8_i32_30 : i32
    %112 = arith.addi %111, %c1_i32 : i32
    %c8_i32_31 = arith.constant 8 : i32
    %113 = arith.cmpi slt, %112, %c8_i32_31 : i32
    %114 = arith.select %113, %110, %59 : vector<8x32xf32>
    %115 = arith.select %113, %108, %60 : vector<8x32xf32>
    %116 = arith.maximumf %61, %114 : vector<8x32xf32>
    %c2_i32 = arith.constant 2 : i32
    %117 = arith.index_cast %c2_i32 : i32 to index
    %c0_32 = arith.constant 0 : index
    %c0_33 = arith.constant 0 : index
    %c0_34 = arith.constant 0 : index
    %118 = vector.load %arg2[%117, %c0_32, %c0_33, %c0_34] : memref<8x4x8x32xf32, #tpu.memory_space<vmem>>, vector<1x4x8x32xf32>
    %119 = vector.shape_cast %118 : vector<1x4x8x32xf32> to vector<4x8x32xf32>
    %120 = arith.truncf %114 : vector<8x32xf32> to vector<8x32xbf16>
    %121 = vector.extract_strided_slice %119 {offsets = [0, 0, 0], sizes = [1, 8, 32], strides = [1, 1, 1]} : vector<4x8x32xf32> to vector<1x8x32xf32>
    %122 = vector.shape_cast %121 : vector<1x8x32xf32> to vector<8x32xf32>
    %123 = vector.extract_strided_slice %3 {offsets = [0, 0, 0], sizes = [1, 32, 32], strides = [1, 1, 1]} : vector<4x32x32xbf16> to vector<1x32x32xbf16>
    %124 = vector.shape_cast %123 : vector<1x32x32xbf16> to vector<32x32xbf16>
    %cst_35 = arith.constant dense<0.000000e+00> : vector<8x32xf32>
    %125 = tpu.matmul %120, %124, %cst_35 {dimension_numbers = #tpu.dot_dimension_numbers<[1], [0], [0], [1], [0, 0, 1, 1], [], []>} : vector<8x32xbf16>, vector<32x32xbf16>, vector<8x32xf32> -> vector<8x32xf32>
    %126 = arith.addf %122, %125 : vector<8x32xf32>
    %127 = vector.extract_strided_slice %119 {offsets = [1, 0, 0], sizes = [1, 8, 32], strides = [1, 1, 1]} : vector<4x8x32xf32> to vector<1x8x32xf32>
    %128 = vector.shape_cast %127 : vector<1x8x32xf32> to vector<8x32xf32>
    %129 = vector.extract_strided_slice %3 {offsets = [1, 0, 0], sizes = [1, 32, 32], strides = [1, 1, 1]} : vector<4x32x32xbf16> to vector<1x32x32xbf16>
    %130 = vector.shape_cast %129 : vector<1x32x32xbf16> to vector<32x32xbf16>
    %cst_36 = arith.constant dense<0.000000e+00> : vector<8x32xf32>
    %131 = tpu.matmul %120, %130, %cst_36 {dimension_numbers = #tpu.dot_dimension_numbers<[1], [0], [0], [1], [0, 0, 1, 1], [], []>} : vector<8x32xbf16>, vector<32x32xbf16>, vector<8x32xf32> -> vector<8x32xf32>
    %132 = arith.addf %128, %131 : vector<8x32xf32>
    %133 = vector.extract_strided_slice %119 {offsets = [2, 0, 0], sizes = [1, 8, 32], strides = [1, 1, 1]} : vector<4x8x32xf32> to vector<1x8x32xf32>
    %134 = vector.shape_cast %133 : vector<1x8x32xf32> to vector<8x32xf32>
    %135 = vector.extract_strided_slice %3 {offsets = [2, 0, 0], sizes = [1, 32, 32], strides = [1, 1, 1]} : vector<4x32x32xbf16> to vector<1x32x32xbf16>
    %136 = vector.shape_cast %135 : vector<1x32x32xbf16> to vector<32x32xbf16>
    %cst_37 = arith.constant dense<0.000000e+00> : vector<8x32xf32>
    %137 = tpu.matmul %120, %136, %cst_37 {dimension_numbers = #tpu.dot_dimension_numbers<[1], [0], [0], [1], [0, 0, 1, 1], [], []>} : vector<8x32xbf16>, vector<32x32xbf16>, vector<8x32xf32> -> vector<8x32xf32>
    %138 = arith.addf %134, %137 : vector<8x32xf32>
    %139 = vector.extract_strided_slice %119 {offsets = [3, 0, 0], sizes = [1, 8, 32], strides = [1, 1, 1]} : vector<4x8x32xf32> to vector<1x8x32xf32>
    %140 = vector.shape_cast %139 : vector<1x8x32xf32> to vector<8x32xf32>
    %141 = vector.extract_strided_slice %3 {offsets = [3, 0, 0], sizes = [1, 32, 32], strides = [1, 1, 1]} : vector<4x32x32xbf16> to vector<1x32x32xbf16>
    %142 = vector.shape_cast %141 : vector<1x32x32xbf16> to vector<32x32xbf16>
    %cst_38 = arith.constant dense<0.000000e+00> : vector<8x32xf32>
    %143 = tpu.matmul %120, %142, %cst_38 {dimension_numbers = #tpu.dot_dimension_numbers<[1], [0], [0], [1], [0, 0, 1, 1], [], []>} : vector<8x32xbf16>, vector<32x32xbf16>, vector<8x32xf32> -> vector<8x32xf32>
    %144 = arith.addf %140, %143 : vector<8x32xf32>
    %145 = arith.negf %126 : vector<8x32xf32>
    %146 = math.exp %145 : vector<8x32xf32>
    %cst_39 = arith.constant 1.000000e+00 : f32
    %147 = vector.broadcast %cst_39 : f32 to vector<8x32xf32>
    %148 = arith.addf %147, %146 : vector<8x32xf32>
    %149 = arith.divf %147, %148 : vector<8x32xf32>
    %150 = arith.negf %132 : vector<8x32xf32>
    %151 = math.exp %150 : vector<8x32xf32>
    %cst_40 = arith.constant 1.000000e+00 : f32
    %152 = vector.broadcast %cst_40 : f32 to vector<8x32xf32>
    %153 = arith.addf %152, %151 : vector<8x32xf32>
    %154 = arith.divf %152, %153 : vector<8x32xf32>
    %155 = arith.negf %138 : vector<8x32xf32>
    %156 = math.exp %155 : vector<8x32xf32>
    %cst_41 = arith.constant 1.000000e+00 : f32
    %157 = vector.broadcast %cst_41 : f32 to vector<8x32xf32>
    %158 = arith.addf %157, %156 : vector<8x32xf32>
    %159 = arith.divf %157, %158 : vector<8x32xf32>
    %160 = math.tanh %144 : vector<8x32xf32>
    %161 = arith.mulf %154, %115 : vector<8x32xf32>
    %162 = arith.mulf %149, %160 : vector<8x32xf32>
    %163 = arith.addf %161, %162 : vector<8x32xf32>
    %164 = math.tanh %163 : vector<8x32xf32>
    %165 = arith.mulf %159, %164 : vector<8x32xf32>
    %c8_i32_42 = arith.constant 8 : i32
    %166 = arith.muli %arg1, %c8_i32_42 : i32
    %167 = arith.addi %166, %c2_i32 : i32
    %c8_i32_43 = arith.constant 8 : i32
    %168 = arith.cmpi slt, %167, %c8_i32_43 : i32
    %169 = arith.select %168, %165, %114 : vector<8x32xf32>
    %170 = arith.select %168, %163, %115 : vector<8x32xf32>
    %171 = arith.maximumf %116, %169 : vector<8x32xf32>
    %c3_i32 = arith.constant 3 : i32
    %172 = arith.index_cast %c3_i32 : i32 to index
    %c0_44 = arith.constant 0 : index
    %c0_45 = arith.constant 0 : index
    %c0_46 = arith.constant 0 : index
    %173 = vector.load %arg2[%172, %c0_44, %c0_45, %c0_46] : memref<8x4x8x32xf32, #tpu.memory_space<vmem>>, vector<1x4x8x32xf32>
    %174 = vector.shape_cast %173 : vector<1x4x8x32xf32> to vector<4x8x32xf32>
    %175 = arith.truncf %169 : vector<8x32xf32> to vector<8x32xbf16>
    %176 = vector.extract_strided_slice %174 {offsets = [0, 0, 0], sizes = [1, 8, 32], strides = [1, 1, 1]} : vector<4x8x32xf32> to vector<1x8x32xf32>
    %177 = vector.shape_cast %176 : vector<1x8x32xf32> to vector<8x32xf32>
    %178 = vector.extract_strided_slice %3 {offsets = [0, 0, 0], sizes = [1, 32, 32], strides = [1, 1, 1]} : vector<4x32x32xbf16> to vector<1x32x32xbf16>
    %179 = vector.shape_cast %178 : vector<1x32x32xbf16> to vector<32x32xbf16>
    %cst_47 = arith.constant dense<0.000000e+00> : vector<8x32xf32>
    %180 = tpu.matmul %175, %179, %cst_47 {dimension_numbers = #tpu.dot_dimension_numbers<[1], [0], [0], [1], [0, 0, 1, 1], [], []>} : vector<8x32xbf16>, vector<32x32xbf16>, vector<8x32xf32> -> vector<8x32xf32>
    %181 = arith.addf %177, %180 : vector<8x32xf32>
    %182 = vector.extract_strided_slice %174 {offsets = [1, 0, 0], sizes = [1, 8, 32], strides = [1, 1, 1]} : vector<4x8x32xf32> to vector<1x8x32xf32>
    %183 = vector.shape_cast %182 : vector<1x8x32xf32> to vector<8x32xf32>
    %184 = vector.extract_strided_slice %3 {offsets = [1, 0, 0], sizes = [1, 32, 32], strides = [1, 1, 1]} : vector<4x32x32xbf16> to vector<1x32x32xbf16>
    %185 = vector.shape_cast %184 : vector<1x32x32xbf16> to vector<32x32xbf16>
    %cst_48 = arith.constant dense<0.000000e+00> : vector<8x32xf32>
    %186 = tpu.matmul %175, %185, %cst_48 {dimension_numbers = #tpu.dot_dimension_numbers<[1], [0], [0], [1], [0, 0, 1, 1], [], []>} : vector<8x32xbf16>, vector<32x32xbf16>, vector<8x32xf32> -> vector<8x32xf32>
    %187 = arith.addf %183, %186 : vector<8x32xf32>
    %188 = vector.extract_strided_slice %174 {offsets = [2, 0, 0], sizes = [1, 8, 32], strides = [1, 1, 1]} : vector<4x8x32xf32> to vector<1x8x32xf32>
    %189 = vector.shape_cast %188 : vector<1x8x32xf32> to vector<8x32xf32>
    %190 = vector.extract_strided_slice %3 {offsets = [2, 0, 0], sizes = [1, 32, 32], strides = [1, 1, 1]} : vector<4x32x32xbf16> to vector<1x32x32xbf16>
    %191 = vector.shape_cast %190 : vector<1x32x32xbf16> to vector<32x32xbf16>
    %cst_49 = arith.constant dense<0.000000e+00> : vector<8x32xf32>
    %192 = tpu.matmul %175, %191, %cst_49 {dimension_numbers = #tpu.dot_dimension_numbers<[1], [0], [0], [1], [0, 0, 1, 1], [], []>} : vector<8x32xbf16>, vector<32x32xbf16>, vector<8x32xf32> -> vector<8x32xf32>
    %193 = arith.addf %189, %192 : vector<8x32xf32>
    %194 = vector.extract_strided_slice %174 {offsets = [3, 0, 0], sizes = [1, 8, 32], strides = [1, 1, 1]} : vector<4x8x32xf32> to vector<1x8x32xf32>
    %195 = vector.shape_cast %194 : vector<1x8x32xf32> to vector<8x32xf32>
    %196 = vector.extract_strided_slice %3 {offsets = [3, 0, 0], sizes = [1, 32, 32], strides = [1, 1, 1]} : vector<4x32x32xbf16> to vector<1x32x32xbf16>
    %197 = vector.shape_cast %196 : vector<1x32x32xbf16> to vector<32x32xbf16>
    %cst_50 = arith.constant dense<0.000000e+00> : vector<8x32xf32>
    %198 = tpu.matmul %175, %197, %cst_50 {dimension_numbers = #tpu.dot_dimension_numbers<[1], [0], [0], [1], [0, 0, 1, 1], [], []>} : vector<8x32xbf16>, vector<32x32xbf16>, vector<8x32xf32> -> vector<8x32xf32>
    %199 = arith.addf %195, %198 : vector<8x32xf32>
    %200 = arith.negf %181 : vector<8x32xf32>
    %201 = math.exp %200 : vector<8x32xf32>
    %cst_51 = arith.constant 1.000000e+00 : f32
    %202 = vector.broadcast %cst_51 : f32 to vector<8x32xf32>
    %203 = arith.addf %202, %201 : vector<8x32xf32>
    %204 = arith.divf %202, %203 : vector<8x32xf32>
    %205 = arith.negf %187 : vector<8x32xf32>
    %206 = math.exp %205 : vector<8x32xf32>
    %cst_52 = arith.constant 1.000000e+00 : f32
    %207 = vector.broadcast %cst_52 : f32 to vector<8x32xf32>
    %208 = arith.addf %207, %206 : vector<8x32xf32>
    %209 = arith.divf %207, %208 : vector<8x32xf32>
    %210 = arith.negf %193 : vector<8x32xf32>
    %211 = math.exp %210 : vector<8x32xf32>
    %cst_53 = arith.constant 1.000000e+00 : f32
    %212 = vector.broadcast %cst_53 : f32 to vector<8x32xf32>
    %213 = arith.addf %212, %211 : vector<8x32xf32>
    %214 = arith.divf %212, %213 : vector<8x32xf32>
    %215 = math.tanh %199 : vector<8x32xf32>
    %216 = arith.mulf %209, %170 : vector<8x32xf32>
    %217 = arith.mulf %204, %215 : vector<8x32xf32>
    %218 = arith.addf %216, %217 : vector<8x32xf32>
    %219 = math.tanh %218 : vector<8x32xf32>
    %220 = arith.mulf %214, %219 : vector<8x32xf32>
    %c8_i32_54 = arith.constant 8 : i32
    %221 = arith.muli %arg1, %c8_i32_54 : i32
    %222 = arith.addi %221, %c3_i32 : i32
    %c8_i32_55 = arith.constant 8 : i32
    %223 = arith.cmpi slt, %222, %c8_i32_55 : i32
    %224 = arith.select %223, %220, %169 : vector<8x32xf32>
    %225 = arith.select %223, %218, %170 : vector<8x32xf32>
    %226 = arith.maximumf %171, %224 : vector<8x32xf32>
    %c4_i32 = arith.constant 4 : i32
    %227 = arith.index_cast %c4_i32 : i32 to index
    %c0_56 = arith.constant 0 : index
    %c0_57 = arith.constant 0 : index
    %c0_58 = arith.constant 0 : index
    %228 = vector.load %arg2[%227, %c0_56, %c0_57, %c0_58] : memref<8x4x8x32xf32, #tpu.memory_space<vmem>>, vector<1x4x8x32xf32>
    %229 = vector.shape_cast %228 : vector<1x4x8x32xf32> to vector<4x8x32xf32>
    %230 = arith.truncf %224 : vector<8x32xf32> to vector<8x32xbf16>
    %231 = vector.extract_strided_slice %229 {offsets = [0, 0, 0], sizes = [1, 8, 32], strides = [1, 1, 1]} : vector<4x8x32xf32> to vector<1x8x32xf32>
    %232 = vector.shape_cast %231 : vector<1x8x32xf32> to vector<8x32xf32>
    %233 = vector.extract_strided_slice %3 {offsets = [0, 0, 0], sizes = [1, 32, 32], strides = [1, 1, 1]} : vector<4x32x32xbf16> to vector<1x32x32xbf16>
    %234 = vector.shape_cast %233 : vector<1x32x32xbf16> to vector<32x32xbf16>
    %cst_59 = arith.constant dense<0.000000e+00> : vector<8x32xf32>
    %235 = tpu.matmul %230, %234, %cst_59 {dimension_numbers = #tpu.dot_dimension_numbers<[1], [0], [0], [1], [0, 0, 1, 1], [], []>} : vector<8x32xbf16>, vector<32x32xbf16>, vector<8x32xf32> -> vector<8x32xf32>
    %236 = arith.addf %232, %235 : vector<8x32xf32>
    %237 = vector.extract_strided_slice %229 {offsets = [1, 0, 0], sizes = [1, 8, 32], strides = [1, 1, 1]} : vector<4x8x32xf32> to vector<1x8x32xf32>
    %238 = vector.shape_cast %237 : vector<1x8x32xf32> to vector<8x32xf32>
    %239 = vector.extract_strided_slice %3 {offsets = [1, 0, 0], sizes = [1, 32, 32], strides = [1, 1, 1]} : vector<4x32x32xbf16> to vector<1x32x32xbf16>
    %240 = vector.shape_cast %239 : vector<1x32x32xbf16> to vector<32x32xbf16>
    %cst_60 = arith.constant dense<0.000000e+00> : vector<8x32xf32>
    %241 = tpu.matmul %230, %240, %cst_60 {dimension_numbers = #tpu.dot_dimension_numbers<[1], [0], [0], [1], [0, 0, 1, 1], [], []>} : vector<8x32xbf16>, vector<32x32xbf16>, vector<8x32xf32> -> vector<8x32xf32>
    %242 = arith.addf %238, %241 : vector<8x32xf32>
    %243 = vector.extract_strided_slice %229 {offsets = [2, 0, 0], sizes = [1, 8, 32], strides = [1, 1, 1]} : vector<4x8x32xf32> to vector<1x8x32xf32>
    %244 = vector.shape_cast %243 : vector<1x8x32xf32> to vector<8x32xf32>
    %245 = vector.extract_strided_slice %3 {offsets = [2, 0, 0], sizes = [1, 32, 32], strides = [1, 1, 1]} : vector<4x32x32xbf16> to vector<1x32x32xbf16>
    %246 = vector.shape_cast %245 : vector<1x32x32xbf16> to vector<32x32xbf16>
    %cst_61 = arith.constant dense<0.000000e+00> : vector<8x32xf32>
    %247 = tpu.matmul %230, %246, %cst_61 {dimension_numbers = #tpu.dot_dimension_numbers<[1], [0], [0], [1], [0, 0, 1, 1], [], []>} : vector<8x32xbf16>, vector<32x32xbf16>, vector<8x32xf32> -> vector<8x32xf32>
    %248 = arith.addf %244, %247 : vector<8x32xf32>
    %249 = vector.extract_strided_slice %229 {offsets = [3, 0, 0], sizes = [1, 8, 32], strides = [1, 1, 1]} : vector<4x8x32xf32> to vector<1x8x32xf32>
    %250 = vector.shape_cast %249 : vector<1x8x32xf32> to vector<8x32xf32>
    %251 = vector.extract_strided_slice %3 {offsets = [3, 0, 0], sizes = [1, 32, 32], strides = [1, 1, 1]} : vector<4x32x32xbf16> to vector<1x32x32xbf16>
    %252 = vector.shape_cast %251 : vector<1x32x32xbf16> to vector<32x32xbf16>
    %cst_62 = arith.constant dense<0.000000e+00> : vector<8x32xf32>
    %253 = tpu.matmul %230, %252, %cst_62 {dimension_numbers = #tpu.dot_dimension_numbers<[1], [0], [0], [1], [0, 0, 1, 1], [], []>} : vector<8x32xbf16>, vector<32x32xbf16>, vector<8x32xf32> -> vector<8x32xf32>
    %254 = arith.addf %250, %253 : vector<8x32xf32>
    %255 = arith.negf %236 : vector<8x32xf32>
    %256 = math.exp %255 : vector<8x32xf32>
    %cst_63 = arith.constant 1.000000e+00 : f32
    %257 = vector.broadcast %cst_63 : f32 to vector<8x32xf32>
    %258 = arith.addf %257, %256 : vector<8x32xf32>
    %259 = arith.divf %257, %258 : vector<8x32xf32>
    %260 = arith.negf %242 : vector<8x32xf32>
    %261 = math.exp %260 : vector<8x32xf32>
    %cst_64 = arith.constant 1.000000e+00 : f32
    %262 = vector.broadcast %cst_64 : f32 to vector<8x32xf32>
    %263 = arith.addf %262, %261 : vector<8x32xf32>
    %264 = arith.divf %262, %263 : vector<8x32xf32>
    %265 = arith.negf %248 : vector<8x32xf32>
    %266 = math.exp %265 : vector<8x32xf32>
    %cst_65 = arith.constant 1.000000e+00 : f32
    %267 = vector.broadcast %cst_65 : f32 to vector<8x32xf32>
    %268 = arith.addf %267, %266 : vector<8x32xf32>
    %269 = arith.divf %267, %268 : vector<8x32xf32>
    %270 = math.tanh %254 : vector<8x32xf32>
    %271 = arith.mulf %264, %225 : vector<8x32xf32>
    %272 = arith.mulf %259, %270 : vector<8x32xf32>
    %273 = arith.addf %271, %272 : vector<8x32xf32>
    %274 = math.tanh %273 : vector<8x32xf32>
    %275 = arith.mulf %269, %274 : vector<8x32xf32>
    %c8_i32_66 = arith.constant 8 : i32
    %276 = arith.muli %arg1, %c8_i32_66 : i32
    %277 = arith.addi %276, %c4_i32 : i32
    %c8_i32_67 = arith.constant 8 : i32
    %278 = arith.cmpi slt, %277, %c8_i32_67 : i32
    %279 = arith.select %278, %275, %224 : vector<8x32xf32>
    %280 = arith.select %278, %273, %225 : vector<8x32xf32>
    %281 = arith.maximumf %226, %279 : vector<8x32xf32>
    %c5_i32 = arith.constant 5 : i32
    %282 = arith.index_cast %c5_i32 : i32 to index
    %c0_68 = arith.constant 0 : index
    %c0_69 = arith.constant 0 : index
    %c0_70 = arith.constant 0 : index
    %283 = vector.load %arg2[%282, %c0_68, %c0_69, %c0_70] : memref<8x4x8x32xf32, #tpu.memory_space<vmem>>, vector<1x4x8x32xf32>
    %284 = vector.shape_cast %283 : vector<1x4x8x32xf32> to vector<4x8x32xf32>
    %285 = arith.truncf %279 : vector<8x32xf32> to vector<8x32xbf16>
    %286 = vector.extract_strided_slice %284 {offsets = [0, 0, 0], sizes = [1, 8, 32], strides = [1, 1, 1]} : vector<4x8x32xf32> to vector<1x8x32xf32>
    %287 = vector.shape_cast %286 : vector<1x8x32xf32> to vector<8x32xf32>
    %288 = vector.extract_strided_slice %3 {offsets = [0, 0, 0], sizes = [1, 32, 32], strides = [1, 1, 1]} : vector<4x32x32xbf16> to vector<1x32x32xbf16>
    %289 = vector.shape_cast %288 : vector<1x32x32xbf16> to vector<32x32xbf16>
    %cst_71 = arith.constant dense<0.000000e+00> : vector<8x32xf32>
    %290 = tpu.matmul %285, %289, %cst_71 {dimension_numbers = #tpu.dot_dimension_numbers<[1], [0], [0], [1], [0, 0, 1, 1], [], []>} : vector<8x32xbf16>, vector<32x32xbf16>, vector<8x32xf32> -> vector<8x32xf32>
    %291 = arith.addf %287, %290 : vector<8x32xf32>
    %292 = vector.extract_strided_slice %284 {offsets = [1, 0, 0], sizes = [1, 8, 32], strides = [1, 1, 1]} : vector<4x8x32xf32> to vector<1x8x32xf32>
    %293 = vector.shape_cast %292 : vector<1x8x32xf32> to vector<8x32xf32>
    %294 = vector.extract_strided_slice %3 {offsets = [1, 0, 0], sizes = [1, 32, 32], strides = [1, 1, 1]} : vector<4x32x32xbf16> to vector<1x32x32xbf16>
    %295 = vector.shape_cast %294 : vector<1x32x32xbf16> to vector<32x32xbf16>
    %cst_72 = arith.constant dense<0.000000e+00> : vector<8x32xf32>
    %296 = tpu.matmul %285, %295, %cst_72 {dimension_numbers = #tpu.dot_dimension_numbers<[1], [0], [0], [1], [0, 0, 1, 1], [], []>} : vector<8x32xbf16>, vector<32x32xbf16>, vector<8x32xf32> -> vector<8x32xf32>
    %297 = arith.addf %293, %296 : vector<8x32xf32>
    %298 = vector.extract_strided_slice %284 {offsets = [2, 0, 0], sizes = [1, 8, 32], strides = [1, 1, 1]} : vector<4x8x32xf32> to vector<1x8x32xf32>
    %299 = vector.shape_cast %298 : vector<1x8x32xf32> to vector<8x32xf32>
    %300 = vector.extract_strided_slice %3 {offsets = [2, 0, 0], sizes = [1, 32, 32], strides = [1, 1, 1]} : vector<4x32x32xbf16> to vector<1x32x32xbf16>
    %301 = vector.shape_cast %300 : vector<1x32x32xbf16> to vector<32x32xbf16>
    %cst_73 = arith.constant dense<0.000000e+00> : vector<8x32xf32>
    %302 = tpu.matmul %285, %301, %cst_73 {dimension_numbers = #tpu.dot_dimension_numbers<[1], [0], [0], [1], [0, 0, 1, 1], [], []>} : vector<8x32xbf16>, vector<32x32xbf16>, vector<8x32xf32> -> vector<8x32xf32>
    %303 = arith.addf %299, %302 : vector<8x32xf32>
    %304 = vector.extract_strided_slice %284 {offsets = [3, 0, 0], sizes = [1, 8, 32], strides = [1, 1, 1]} : vector<4x8x32xf32> to vector<1x8x32xf32>
    %305 = vector.shape_cast %304 : vector<1x8x32xf32> to vector<8x32xf32>
    %306 = vector.extract_strided_slice %3 {offsets = [3, 0, 0], sizes = [1, 32, 32], strides = [1, 1, 1]} : vector<4x32x32xbf16> to vector<1x32x32xbf16>
    %307 = vector.shape_cast %306 : vector<1x32x32xbf16> to vector<32x32xbf16>
    %cst_74 = arith.constant dense<0.000000e+00> : vector<8x32xf32>
    %308 = tpu.matmul %285, %307, %cst_74 {dimension_numbers = #tpu.dot_dimension_numbers<[1], [0], [0], [1], [0, 0, 1, 1], [], []>} : vector<8x32xbf16>, vector<32x32xbf16>, vector<8x32xf32> -> vector<8x32xf32>
    %309 = arith.addf %305, %308 : vector<8x32xf32>
    %310 = arith.negf %291 : vector<8x32xf32>
    %311 = math.exp %310 : vector<8x32xf32>
    %cst_75 = arith.constant 1.000000e+00 : f32
    %312 = vector.broadcast %cst_75 : f32 to vector<8x32xf32>
    %313 = arith.addf %312, %311 : vector<8x32xf32>
    %314 = arith.divf %312, %313 : vector<8x32xf32>
    %315 = arith.negf %297 : vector<8x32xf32>
    %316 = math.exp %315 : vector<8x32xf32>
    %cst_76 = arith.constant 1.000000e+00 : f32
    %317 = vector.broadcast %cst_76 : f32 to vector<8x32xf32>
    %318 = arith.addf %317, %316 : vector<8x32xf32>
    %319 = arith.divf %317, %318 : vector<8x32xf32>
    %320 = arith.negf %303 : vector<8x32xf32>
    %321 = math.exp %320 : vector<8x32xf32>
    %cst_77 = arith.constant 1.000000e+00 : f32
    %322 = vector.broadcast %cst_77 : f32 to vector<8x32xf32>
    %323 = arith.addf %322, %321 : vector<8x32xf32>
    %324 = arith.divf %322, %323 : vector<8x32xf32>
    %325 = math.tanh %309 : vector<8x32xf32>
    %326 = arith.mulf %319, %280 : vector<8x32xf32>
    %327 = arith.mulf %314, %325 : vector<8x32xf32>
    %328 = arith.addf %326, %327 : vector<8x32xf32>
    %329 = math.tanh %328 : vector<8x32xf32>
    %330 = arith.mulf %324, %329 : vector<8x32xf32>
    %c8_i32_78 = arith.constant 8 : i32
    %331 = arith.muli %arg1, %c8_i32_78 : i32
    %332 = arith.addi %331, %c5_i32 : i32
    %c8_i32_79 = arith.constant 8 : i32
    %333 = arith.cmpi slt, %332, %c8_i32_79 : i32
    %334 = arith.select %333, %330, %279 : vector<8x32xf32>
    %335 = arith.select %333, %328, %280 : vector<8x32xf32>
    %336 = arith.maximumf %281, %334 : vector<8x32xf32>
    %c6_i32 = arith.constant 6 : i32
    %337 = arith.index_cast %c6_i32 : i32 to index
    %c0_80 = arith.constant 0 : index
    %c0_81 = arith.constant 0 : index
    %c0_82 = arith.constant 0 : index
    %338 = vector.load %arg2[%337, %c0_80, %c0_81, %c0_82] : memref<8x4x8x32xf32, #tpu.memory_space<vmem>>, vector<1x4x8x32xf32>
    %339 = vector.shape_cast %338 : vector<1x4x8x32xf32> to vector<4x8x32xf32>
    %340 = arith.truncf %334 : vector<8x32xf32> to vector<8x32xbf16>
    %341 = vector.extract_strided_slice %339 {offsets = [0, 0, 0], sizes = [1, 8, 32], strides = [1, 1, 1]} : vector<4x8x32xf32> to vector<1x8x32xf32>
    %342 = vector.shape_cast %341 : vector<1x8x32xf32> to vector<8x32xf32>
    %343 = vector.extract_strided_slice %3 {offsets = [0, 0, 0], sizes = [1, 32, 32], strides = [1, 1, 1]} : vector<4x32x32xbf16> to vector<1x32x32xbf16>
    %344 = vector.shape_cast %343 : vector<1x32x32xbf16> to vector<32x32xbf16>
    %cst_83 = arith.constant dense<0.000000e+00> : vector<8x32xf32>
    %345 = tpu.matmul %340, %344, %cst_83 {dimension_numbers = #tpu.dot_dimension_numbers<[1], [0], [0], [1], [0, 0, 1, 1], [], []>} : vector<8x32xbf16>, vector<32x32xbf16>, vector<8x32xf32> -> vector<8x32xf32>
    %346 = arith.addf %342, %345 : vector<8x32xf32>
    %347 = vector.extract_strided_slice %339 {offsets = [1, 0, 0], sizes = [1, 8, 32], strides = [1, 1, 1]} : vector<4x8x32xf32> to vector<1x8x32xf32>
    %348 = vector.shape_cast %347 : vector<1x8x32xf32> to vector<8x32xf32>
    %349 = vector.extract_strided_slice %3 {offsets = [1, 0, 0], sizes = [1, 32, 32], strides = [1, 1, 1]} : vector<4x32x32xbf16> to vector<1x32x32xbf16>
    %350 = vector.shape_cast %349 : vector<1x32x32xbf16> to vector<32x32xbf16>
    %cst_84 = arith.constant dense<0.000000e+00> : vector<8x32xf32>
    %351 = tpu.matmul %340, %350, %cst_84 {dimension_numbers = #tpu.dot_dimension_numbers<[1], [0], [0], [1], [0, 0, 1, 1], [], []>} : vector<8x32xbf16>, vector<32x32xbf16>, vector<8x32xf32> -> vector<8x32xf32>
    %352 = arith.addf %348, %351 : vector<8x32xf32>
    %353 = vector.extract_strided_slice %339 {offsets = [2, 0, 0], sizes = [1, 8, 32], strides = [1, 1, 1]} : vector<4x8x32xf32> to vector<1x8x32xf32>
    %354 = vector.shape_cast %353 : vector<1x8x32xf32> to vector<8x32xf32>
    %355 = vector.extract_strided_slice %3 {offsets = [2, 0, 0], sizes = [1, 32, 32], strides = [1, 1, 1]} : vector<4x32x32xbf16> to vector<1x32x32xbf16>
    %356 = vector.shape_cast %355 : vector<1x32x32xbf16> to vector<32x32xbf16>
    %cst_85 = arith.constant dense<0.000000e+00> : vector<8x32xf32>
    %357 = tpu.matmul %340, %356, %cst_85 {dimension_numbers = #tpu.dot_dimension_numbers<[1], [0], [0], [1], [0, 0, 1, 1], [], []>} : vector<8x32xbf16>, vector<32x32xbf16>, vector<8x32xf32> -> vector<8x32xf32>
    %358 = arith.addf %354, %357 : vector<8x32xf32>
    %359 = vector.extract_strided_slice %339 {offsets = [3, 0, 0], sizes = [1, 8, 32], strides = [1, 1, 1]} : vector<4x8x32xf32> to vector<1x8x32xf32>
    %360 = vector.shape_cast %359 : vector<1x8x32xf32> to vector<8x32xf32>
    %361 = vector.extract_strided_slice %3 {offsets = [3, 0, 0], sizes = [1, 32, 32], strides = [1, 1, 1]} : vector<4x32x32xbf16> to vector<1x32x32xbf16>
    %362 = vector.shape_cast %361 : vector<1x32x32xbf16> to vector<32x32xbf16>
    %cst_86 = arith.constant dense<0.000000e+00> : vector<8x32xf32>
    %363 = tpu.matmul %340, %362, %cst_86 {dimension_numbers = #tpu.dot_dimension_numbers<[1], [0], [0], [1], [0, 0, 1, 1], [], []>} : vector<8x32xbf16>, vector<32x32xbf16>, vector<8x32xf32> -> vector<8x32xf32>
    %364 = arith.addf %360, %363 : vector<8x32xf32>
    %365 = arith.negf %346 : vector<8x32xf32>
    %366 = math.exp %365 : vector<8x32xf32>
    %cst_87 = arith.constant 1.000000e+00 : f32
    %367 = vector.broadcast %cst_87 : f32 to vector<8x32xf32>
    %368 = arith.addf %367, %366 : vector<8x32xf32>
    %369 = arith.divf %367, %368 : vector<8x32xf32>
    %370 = arith.negf %352 : vector<8x32xf32>
    %371 = math.exp %370 : vector<8x32xf32>
    %cst_88 = arith.constant 1.000000e+00 : f32
    %372 = vector.broadcast %cst_88 : f32 to vector<8x32xf32>
    %373 = arith.addf %372, %371 : vector<8x32xf32>
    %374 = arith.divf %372, %373 : vector<8x32xf32>
    %375 = arith.negf %358 : vector<8x32xf32>
    %376 = math.exp %375 : vector<8x32xf32>
    %cst_89 = arith.constant 1.000000e+00 : f32
    %377 = vector.broadcast %cst_89 : f32 to vector<8x32xf32>
    %378 = arith.addf %377, %376 : vector<8x32xf32>
    %379 = arith.divf %377, %378 : vector<8x32xf32>
    %380 = math.tanh %364 : vector<8x32xf32>
    %381 = arith.mulf %374, %335 : vector<8x32xf32>
    %382 = arith.mulf %369, %380 : vector<8x32xf32>
    %383 = arith.addf %381, %382 : vector<8x32xf32>
    %384 = math.tanh %383 : vector<8x32xf32>
    %385 = arith.mulf %379, %384 : vector<8x32xf32>
    %c8_i32_90 = arith.constant 8 : i32
    %386 = arith.muli %arg1, %c8_i32_90 : i32
    %387 = arith.addi %386, %c6_i32 : i32
    %c8_i32_91 = arith.constant 8 : i32
    %388 = arith.cmpi slt, %387, %c8_i32_91 : i32
    %389 = arith.select %388, %385, %334 : vector<8x32xf32>
    %390 = arith.select %388, %383, %335 : vector<8x32xf32>
    %391 = arith.maximumf %336, %389 : vector<8x32xf32>
    %c7_i32 = arith.constant 7 : i32
    %392 = arith.index_cast %c7_i32 : i32 to index
    %c0_92 = arith.constant 0 : index
    %c0_93 = arith.constant 0 : index
    %c0_94 = arith.constant 0 : index
    %393 = vector.load %arg2[%392, %c0_92, %c0_93, %c0_94] : memref<8x4x8x32xf32, #tpu.memory_space<vmem>>, vector<1x4x8x32xf32>
    %394 = vector.shape_cast %393 : vector<1x4x8x32xf32> to vector<4x8x32xf32>
    %395 = arith.truncf %389 : vector<8x32xf32> to vector<8x32xbf16>
    %396 = vector.extract_strided_slice %394 {offsets = [0, 0, 0], sizes = [1, 8, 32], strides = [1, 1, 1]} : vector<4x8x32xf32> to vector<1x8x32xf32>
    %397 = vector.shape_cast %396 : vector<1x8x32xf32> to vector<8x32xf32>
    %398 = vector.extract_strided_slice %3 {offsets = [0, 0, 0], sizes = [1, 32, 32], strides = [1, 1, 1]} : vector<4x32x32xbf16> to vector<1x32x32xbf16>
    %399 = vector.shape_cast %398 : vector<1x32x32xbf16> to vector<32x32xbf16>
    %cst_95 = arith.constant dense<0.000000e+00> : vector<8x32xf32>
    %400 = tpu.matmul %395, %399, %cst_95 {dimension_numbers = #tpu.dot_dimension_numbers<[1], [0], [0], [1], [0, 0, 1, 1], [], []>} : vector<8x32xbf16>, vector<32x32xbf16>, vector<8x32xf32> -> vector<8x32xf32>
    %401 = arith.addf %397, %400 : vector<8x32xf32>
    %402 = vector.extract_strided_slice %394 {offsets = [1, 0, 0], sizes = [1, 8, 32], strides = [1, 1, 1]} : vector<4x8x32xf32> to vector<1x8x32xf32>
    %403 = vector.shape_cast %402 : vector<1x8x32xf32> to vector<8x32xf32>
    %404 = vector.extract_strided_slice %3 {offsets = [1, 0, 0], sizes = [1, 32, 32], strides = [1, 1, 1]} : vector<4x32x32xbf16> to vector<1x32x32xbf16>
    %405 = vector.shape_cast %404 : vector<1x32x32xbf16> to vector<32x32xbf16>
    %cst_96 = arith.constant dense<0.000000e+00> : vector<8x32xf32>
    %406 = tpu.matmul %395, %405, %cst_96 {dimension_numbers = #tpu.dot_dimension_numbers<[1], [0], [0], [1], [0, 0, 1, 1], [], []>} : vector<8x32xbf16>, vector<32x32xbf16>, vector<8x32xf32> -> vector<8x32xf32>
    %407 = arith.addf %403, %406 : vector<8x32xf32>
    %408 = vector.extract_strided_slice %394 {offsets = [2, 0, 0], sizes = [1, 8, 32], strides = [1, 1, 1]} : vector<4x8x32xf32> to vector<1x8x32xf32>
    %409 = vector.shape_cast %408 : vector<1x8x32xf32> to vector<8x32xf32>
    %410 = vector.extract_strided_slice %3 {offsets = [2, 0, 0], sizes = [1, 32, 32], strides = [1, 1, 1]} : vector<4x32x32xbf16> to vector<1x32x32xbf16>
    %411 = vector.shape_cast %410 : vector<1x32x32xbf16> to vector<32x32xbf16>
    %cst_97 = arith.constant dense<0.000000e+00> : vector<8x32xf32>
    %412 = tpu.matmul %395, %411, %cst_97 {dimension_numbers = #tpu.dot_dimension_numbers<[1], [0], [0], [1], [0, 0, 1, 1], [], []>} : vector<8x32xbf16>, vector<32x32xbf16>, vector<8x32xf32> -> vector<8x32xf32>
    %413 = arith.addf %409, %412 : vector<8x32xf32>
    %414 = vector.extract_strided_slice %394 {offsets = [3, 0, 0], sizes = [1, 8, 32], strides = [1, 1, 1]} : vector<4x8x32xf32> to vector<1x8x32xf32>
    %415 = vector.shape_cast %414 : vector<1x8x32xf32> to vector<8x32xf32>
    %416 = vector.extract_strided_slice %3 {offsets = [3, 0, 0], sizes = [1, 32, 32], strides = [1, 1, 1]} : vector<4x32x32xbf16> to vector<1x32x32xbf16>
    %417 = vector.shape_cast %416 : vector<1x32x32xbf16> to vector<32x32xbf16>
    %cst_98 = arith.constant dense<0.000000e+00> : vector<8x32xf32>
    %418 = tpu.matmul %395, %417, %cst_98 {dimension_numbers = #tpu.dot_dimension_numbers<[1], [0], [0], [1], [0, 0, 1, 1], [], []>} : vector<8x32xbf16>, vector<32x32xbf16>, vector<8x32xf32> -> vector<8x32xf32>
    %419 = arith.addf %415, %418 : vector<8x32xf32>
    %420 = arith.negf %401 : vector<8x32xf32>
    %421 = math.exp %420 : vector<8x32xf32>
    %cst_99 = arith.constant 1.000000e+00 : f32
    %422 = vector.broadcast %cst_99 : f32 to vector<8x32xf32>
    %423 = arith.addf %422, %421 : vector<8x32xf32>
    %424 = arith.divf %422, %423 : vector<8x32xf32>
    %425 = arith.negf %407 : vector<8x32xf32>
    %426 = math.exp %425 : vector<8x32xf32>
    %cst_100 = arith.constant 1.000000e+00 : f32
    %427 = vector.broadcast %cst_100 : f32 to vector<8x32xf32>
    %428 = arith.addf %427, %426 : vector<8x32xf32>
    %429 = arith.divf %427, %428 : vector<8x32xf32>
    %430 = arith.negf %413 : vector<8x32xf32>
    %431 = math.exp %430 : vector<8x32xf32>
    %cst_101 = arith.constant 1.000000e+00 : f32
    %432 = vector.broadcast %cst_101 : f32 to vector<8x32xf32>
    %433 = arith.addf %432, %431 : vector<8x32xf32>
    %434 = arith.divf %432, %433 : vector<8x32xf32>
    %435 = math.tanh %419 : vector<8x32xf32>
    %436 = arith.mulf %429, %390 : vector<8x32xf32>
    %437 = arith.mulf %424, %435 : vector<8x32xf32>
    %438 = arith.addf %436, %437 : vector<8x32xf32>
    %439 = math.tanh %438 : vector<8x32xf32>
    %440 = arith.mulf %434, %439 : vector<8x32xf32>
    %c8_i32_102 = arith.constant 8 : i32
    %441 = arith.muli %arg1, %c8_i32_102 : i32
    %442 = arith.addi %441, %c7_i32 : i32
    %c8_i32_103 = arith.constant 8 : i32
    %443 = arith.cmpi slt, %442, %c8_i32_103 : i32
    %444 = arith.select %443, %440, %389 : vector<8x32xf32>
    %445 = arith.select %443, %438, %390 : vector<8x32xf32>
    %446 = arith.maximumf %391, %444 : vector<8x32xf32>
    %c8_i32_104 = arith.constant 8 : i32
    %c0_105 = arith.constant 0 : index
    %c0_106 = arith.constant 0 : index
    %447 = vector.load %arg9[%c0_105, %c0_106] : memref<8x32xf32, #tpu.memory_space<vmem>>, vector<8x32xf32>
    tpu.vector_store %arg9[%c0_105, %c0_106], %444 {strides = array<i32>} : memref<8x32xf32, #tpu.memory_space<vmem>>, vector<8x32xf32>,
    %c0_107 = arith.constant 0 : index
    %c0_108 = arith.constant 0 : index
    %448 = vector.load %arg10[%c0_107, %c0_108] : memref<8x32xf32, #tpu.memory_space<vmem>>, vector<8x32xf32>
    tpu.vector_store %arg10[%c0_107, %c0_108], %445 {strides = array<i32>} : memref<8x32xf32, #tpu.memory_space<vmem>>, vector<8x32xf32>,
    %c0_109 = arith.constant 0 : index
    %c0_110 = arith.constant 0 : index
    %449 = vector.load %arg11[%c0_109, %c0_110] : memref<8x32xf32, #tpu.memory_space<vmem>>, vector<8x32xf32>
    tpu.vector_store %arg11[%c0_109, %c0_110], %446 {strides = array<i32>} : memref<8x32xf32, #tpu.memory_space<vmem>>, vector<8x32xf32>,
    %c0_i32_111 = arith.constant 0 : i32
    %450 = arith.cmpi eq, %arg1, %c0_i32_111 : i32
    %451 = arith.extui %450 : i1 to i32
    %c0_i32_112 = arith.constant 0 : i32
    %452 = arith.cmpi ne, %451, %c0_i32_112 : i32
    scf.if %452 {
      %c0_113 = arith.constant 0 : index
      %c0_114 = arith.constant 0 : index
      %453 = vector.load %arg11[%c0_113, %c0_114] : memref<8x32xf32, #tpu.memory_space<vmem>>, vector<8x32xf32>
      %cst_115 = arith.constant 0.000000e+00 : f32
      %454 = vector.broadcast %cst_115 : f32 to vector<8x32xf32>
      %455 = arith.maximumf %453, %454 : vector<8x32xf32>
      %c0_116 = arith.constant 0 : index
      %c0_117 = arith.constant 0 : index
      %456 = vector.load %arg4[%c0_116, %c0_117] : memref<32x16xf32, #tpu.memory_space<vmem>>, vector<32x16xf32>
      %cst_118 = arith.constant dense<0.000000e+00> : vector<8x16xf32>
      %457 = tpu.matmul %455, %456, %cst_118 {dimension_numbers = #tpu.dot_dimension_numbers<[1], [0], [0], [1], [0, 0, 1, 1], [], []>} : vector<8x32xf32>, vector<32x16xf32>, vector<8x16xf32> -> vector<8x16xf32>
      %c0_119 = arith.constant 0 : index
      %c0_120 = arith.constant 0 : index
      %458 = vector.load %arg5[%c0_119, %c0_120] : memref<1x16xf32, #tpu.memory_space<vmem>>, vector<1x16xf32>
      %459 = vector.broadcast %458 : vector<1x16xf32> to vector<8x16xf32>
      %460 = arith.addf %457, %459 : vector<8x16xf32>
      %c0_121 = arith.constant 0 : index
      %c0_122 = arith.constant 0 : index
      %461 = vector.load %arg6[%c0_121, %c0_122] : memref<16x128xf32, #tpu.memory_space<vmem>>, vector<16x128xf32>
      %cst_123 = arith.constant dense<0.000000e+00> : vector<8x128xf32>
      %462 = tpu.matmul %460, %461, %cst_123 {dimension_numbers = #tpu.dot_dimension_numbers<[1], [0], [0], [1], [0, 0, 1, 1], [], []>} : vector<8x16xf32>, vector<16x128xf32>, vector<8x128xf32> -> vector<8x128xf32>
      %c0_124 = arith.constant 0 : index
      %c0_125 = arith.constant 0 : index
      %463 = vector.load %arg7[%c0_124, %c0_125] : memref<1x128xf32, #tpu.memory_space<vmem>>, vector<1x128xf32>
      %464 = vector.broadcast %463 : vector<1x128xf32> to vector<8x128xf32>
      %465 = arith.addf %462, %464 : vector<8x128xf32>
      %c0_126 = arith.constant 0 : index
      %c0_127 = arith.constant 0 : index
      %466 = vector.load %arg8[%c0_126, %c0_127] : memref<8x128xf32, #tpu.memory_space<vmem>>, vector<8x128xf32>
      tpu.vector_store %arg8[%c0_126, %c0_127], %465 {strides = array<i32>} : memref<8x128xf32, #tpu.memory_space<vmem>>, vector<8x128xf32>,
    } else {
    }
    return
  }
  func.func @transform_0(%arg0: i32, %arg1: i32) -> (i32, i32, i32, i32) {
    %c0_i32 = arith.constant 0 : i32
    %c0_i32_0 = arith.constant 0 : i32
    %c0_i32_1 = arith.constant 0 : i32
    return %arg1, %c0_i32, %arg0, %c0_i32_0 : i32, i32, i32, i32
  }
  func.func @transform_1(%arg0: i32, %arg1: i32) -> (i32, i32, i32) {
    %c0_i32 = arith.constant 0 : i32
    %c0_i32_0 = arith.constant 0 : i32
    %c0_i32_1 = arith.constant 0 : i32
    %c0_i32_2 = arith.constant 0 : i32
    return %c0_i32, %c0_i32_0, %c0_i32_1 : i32, i32, i32
  }
  func.func @transform_2(%arg0: i32, %arg1: i32) -> (i32, i32) {
    %c0_i32 = arith.constant 0 : i32
    %c0_i32_0 = arith.constant 0 : i32
    %c0_i32_1 = arith.constant 0 : i32
    return %c0_i32, %c0_i32_0 : i32, i32
  }
  func.func @transform_3(%arg0: i32, %arg1: i32) -> (i32, i32) {
    %c0_i32 = arith.constant 0 : i32
    %c0_i32_0 = arith.constant 0 : i32
    %c0_i32_1 = arith.constant 0 : i32
    return %c0_i32, %c0_i32_0 : i32, i32
  }
  func.func @transform_4(%arg0: i32, %arg1: i32) -> (i32, i32) {
    %c0_i32 = arith.constant 0 : i32
    %c0_i32_0 = arith.constant 0 : i32
    %c0_i32_1 = arith.constant 0 : i32
    return %c0_i32, %c0_i32_0 : i32, i32
  }
  func.func @transform_5(%arg0: i32, %arg1: i32) -> (i32, i32) {
    %c0_i32 = arith.constant 0 : i32
    %c0_i32_0 = arith.constant 0 : i32
    %c0_i32_1 = arith.constant 0 : i32
    return %c0_i32, %c0_i32_0 : i32, i32
  }
  func.func @transform_6(%arg0: i32, %arg1: i32) -> (i32, i32) {
    %c0_i32 = arith.constant 0 : i32
    %c0_i32_0 = arith.constant 0 : i32
    return %arg0, %c0_i32 : i32, i32
  }
}

</mosaic_0001>

<bundles_post_ra>
// kernel: tpu_custom_call.1
= control target key start
LH: loop header
LB: loop body
LE: loop exit
PB: predicated region body
PF: predicated region fallthrough
CT: control target
= control target key end

     0   :  { %11 = vsyncpa [#allocation6], 0  ;;  %s3059_s0 = inlined_call_operand.hbm [shape: f32[8,4,8,32], index: 0, kind: input, shape index: {}]   ;;  %s3060_s1 = inlined_call_operand.hbm [shape: bf16[4,32,32], index: 1, kind: input, shape index: {}]   ;;  %s3061_s2 = inlined_call_operand.vmem [shape: f32[32,16], index: 2, kind: input, shape index: {}]   ;;  %s3062_s3 = inlined_call_operand.vmem [shape: f32[1,16], index: 3, kind: input, shape index: {}]   ;;  %s3063_s4 = inlined_call_operand.vmem [shape: f32[16,128], index: 4, kind: input, shape index: {}]   ;;  %s3064_s5 = inlined_call_operand.vmem [shape: f32[1,128], index: 5, kind: input, shape index: {}]   ;;  %s3065_s6 = inlined_call_operand.hbm [shape: f32[8,128], index: 6, kind: output, shape index: {}]  }
   0x1   :  { %12 = vsyncpa [#allocation9], 0 }
   0x2   :  { %13 = vsyncpa [#allocation7], 0  ;;  %s2638_s21 = smov [#allocation5]   ;;  %s2566_s25 = scalar_lea.hbm %s3059_s0, 4096 }
   0x3   :  { %s19_s22 = sshll.u32 %s2638_s21, 4  ;;  %p2567_p0 = scmp.ne.s32.totalorder %s3059_s0, %s2566_s25  ;;  %s20_s22 = int_to_ptr.vmem [resolvable:$true] %s19_s22 }
   0x4   :  { %p2570_p1 = scmp.lt.u32.totalorder %s2566_s25, %s3059_s0 }
   0x6   :  { %p2572_p2 = pnand %p2570_p1, %p2567_p0 }
   0x8   :  { %2575 = shalt.err (!%p2572_p2)
}
   0x9   :  { %s2576_s30 = scalar_lea.vmem %s20_s22, 4096  ;;  %p2581_p4 = scmp.lt.s32.totalorder %s20_s22, %s20_s22 }
   0xa   :  { %p2577_p3 = scmp.ne.s32.totalorder %s20_s22, %s2576_s30  ;;  %p2582_p5 = scmp.lt.s32.totalorder %s2576_s30, %s2576_s30 }
   0xc   :  { %p2583_p6 = por %p2582_p5, %p2581_p4 }
   0xe   :  { %p2584_p7 = pnand %p2583_p6, %p2577_p3 }
  0x10   :  { %2587 = shalt.err (!%p2584_p7)
}
  0x11   :  { %s2639_s7 = smov 128   ;;  %s2640_s8 = smov 8  }
  0x12   :  { %25 = dma.hbm_to_vmem [thread:$0]  %s3059_s0, 4096, %s20_s22, [#allocation6], %s2639_s7, %s2639_s7, %s2640_s8  }
  0x13   :  { %s2641_s11 = smov [#allocation8]   ;;  %s2588_s15 = scalar_lea.hbm %s3060_s1, 1024 }
  0x14   :  { %s31_s12 = sshll.u32 %s2641_s11, 4  ;;  %p2589_p8 = scmp.ne.s32.totalorder %s3060_s1, %s2588_s15  ;;  %s32_s12 = int_to_ptr.vmem [resolvable:$true] %s31_s12 }
  0x15   :  { %p2592_p9 = scmp.lt.u32.totalorder %s2588_s15, %s3060_s1 }
  0x17   :  { %p2594_p10 = pnand %p2592_p9, %p2589_p8 }
  0x19   :  { %2597 = shalt.err (!%p2594_p10)
}
  0x1a   :  { %s2598_s20 = scalar_lea.vmem %s32_s12, 1024  ;;  %p2603_p12 = scmp.lt.s32.totalorder %s32_s12, %s32_s12 }
  0x1b   :  { %p2599_p11 = scmp.ne.s32.totalorder %s32_s12, %s2598_s20  ;;  %p2604_p13 = scmp.lt.s32.totalorder %s2598_s20, %s2598_s20 }
  0x1d   :  { %p2605_p0 = por %p2604_p13, %p2603_p12 }
  0x1f   :  { %p2606_p1 = pnand %p2605_p0, %p2599_p11 }
  0x21   :  { %2609 = shalt.err (!%p2606_p1)
}
  0x22   :  { %s2642_s0 = smov 64   ;;  %s2643_s21 = smov 4  }
  0x23   :  { %37 = dma.hbm_to_vmem [thread:$0]  %s3060_s1, 1024, %s32_s12, [#allocation9], %s2642_s0, %s2642_s0, %s2643_s21  }
  0x24   :  { %2632 = dma.done.wait [#allocation6], 4096  }
  0x25   :  { %2633 = vsyncadd [#allocation6], 4294963200 }
  0x26   :  { %2634 = dma.done.wait [#allocation9], 1024  }
  0x27   :  { %2635 = vsyncadd [#allocation9], 4294966272  ;;  %vm57_vm0 = vcmask 261120   ;;  %v2644_v0 = vmov 0.0   ;;  %vm2645_vm1 = vmmov 0   ;;  %v2718_v1 = vld [vmem:[#allocation8] sm:$0xff]  }
  0x28   :  { %2132 = vmatprep.subr.bf16.mxu0 %v2644_v0  ;;  %2140 = vmatprep.subr.bf16.mxu1 %v2644_v0  ;;  %58 = vst.msk [vmem:[#allocation2] sm:$0xff] %vm57_vm0, %v2644_v0  ;;  %59 = vst.msk [vmem:[#allocation3] sm:$0xff] %vm57_vm0, %v2644_v0  ;;  %v2720_v2 = vld [vmem:[#allocation8 + $0x10] sm:$0xff]   ;;  %v2723_v3 = vld [vmem:[#allocation8 + $0x8] sm:$0xff]   ;;  %v2646_v11 = vmov -inf   ;;  %vm1869_vm2 = vcmask 130048  }
  0x29   :  { %2136 = vmatprep.mubr.msk.bf16.mxu0 %vm2645_vm1, %v2644_v0  ;;  %2144 = vmatprep.mubr.msk.bf16.mxu1 %vm2645_vm1, %v2644_v0  ;;  %v2727_v4 = vld [vmem:[#allocation8 + $0x18] sm:$0xff]   ;;  %v2731_v7 = vld [vmem:[#allocation8 + $0x20] sm:$0xff]   ;;  %v2735_v8 = vld [vmem:[#allocation8 + $0x30] sm:$0xff]   ;;  %60 = vst.msk [vmem:[#allocation4] sm:$0xff] %vm57_vm0, %v2646_v11  ;;  %s2648_s13 = smov [#allocation10]  }
  0x2a   :  { %2133 = vmatpush3.bf16.msra.mxu0 %v2718_v1  ;;  %2141 = vmatpush3.bf16.msra.mxu1 %v2720_v2  ;;  %v2741_v9 = vld [vmem:[#allocation8 + $0x28] sm:$0xff]   ;;  %v2745_v10 = vld [vmem:[#allocation8 + $0x38] sm:$0xff]   ;;  %v80_v12 = vld [vmem:[#allocation5] sm:$0xff]  ;;  %s1950_s14 = sshll.u32 %s2648_s13, 4  ;;  %s1951_s14 = int_to_ptr.vmem [resolvable:$true] %s1950_s14 }
  0x2b   :  { %2134 = vmatprep.subr.bf16.mxu0 %v2644_v0  ;;  %2142 = vmatprep.subr.bf16.mxu1 %v2644_v0  ;;  %v81_v13 = vld [vmem:[#allocation5 + $0x8] sm:$0xff]  ;;  %v82_v26 = vld [vmem:[#allocation5 + $0x10] sm:$0xff]  ;;  %v83_v29 = vld [vmem:[#allocation5 + $0x18] sm:$0xff]  ;;  %s2610_s15 = scalar_lea.vmem %s1951_s14, 128  ;;  %p2615_p3 = scmp.lt.s32.totalorder %s1951_s14, %s1951_s14 }
  0x2c   :  { %v334_v56 = vld [vmem:[#allocation5 + $0x20] sm:$0xff]  ;;  %v335_v57 = vld [vmem:[#allocation5 + $0x28] sm:$0xff]  ;;  %p2611_p2 = scmp.ne.s32.totalorder %s1951_s14, %s2610_s15  ;;  %p2616_p4 = scmp.lt.s32.totalorder %s2610_s15, %s2610_s15 }
  0x2e   :  { %2135 = vmatpush3.bf16.msra.mxu0 %v2723_v3  ;;  %2143 = vmatpush3.bf16.msra.mxu1 %v2727_v4  ;;  %p2617_p5 = por %p2616_p4, %p2615_p3 }
  0x2f   :  { %v77_v5 = vld [vmem:[#allocation2] sm:$0xff]  ;;  %2148 = vmatprep.subr.bf16.mxu0 %v2644_v0  ;;  %2156 = vmatprep.subr.bf16.mxu1 %v2644_v0  ;;  %v78_v45 = vld [vmem:[#allocation3] sm:$0xff] }
  0x30   :  { %v84_v6 = vpack.c.bf16 %v77_v5, %v77_v5  ;;  %p2618_p6 = pnand %p2617_p5, %p2611_p2 }
  0x32   :  { %2137 = vmatmul.mubr.msk.bf16.vlgmr.msra.gmra.mrb[0].mxu0 %vm57_vm0, %v84_v6  ;;  %2145 = vmatmul.mubr.msk.bf16.vlgmr.msra.gmra.mrb[0].mxu1 %vm57_vm0, %v84_v6 }
  0x33   :  { %2149 = vmatpush3.bf16.msra.mxu0 %v2731_v7  ;;  %2157 = vmatpush3.bf16.msra.mxu1 %v2735_v8 }
  0x34   :  { %2150 = vmatprep.subr.bf16.mxu0 %v2644_v0  ;;  %2158 = vmatprep.subr.bf16.mxu1 %v2644_v0 }
  0x35   :  { %2152 = vmatprep.mubr.msk.bf16.mxu0 %vm2645_vm1, %v2644_v0  ;;  %2160 = vmatprep.mubr.msk.bf16.mxu1 %vm2645_vm1, %v2644_v0 }
  0x37   :  { %2151 = vmatpush3.bf16.msra.mxu0 %v2741_v9  ;;  %2159 = vmatpush3.bf16.msra.mxu1 %v2745_v10 }
  0x38   :  { %2164 = vmatprep.subr.bf16.mxu0 %v2644_v0  ;;  %2172 = vmatprep.subr.bf16.mxu1 %v2644_v0 }
  0x3a   :  { %2153 = vmatmul.mubr.msk.bf16.vlgmr.msra.gmra.mrb[4].mxu0 %vm57_vm0, %v84_v6  ;;  %2161 = vmatmul.mubr.msk.bf16.vlgmr.msra.gmra.mrb[4].mxu1 %vm57_vm0, %v84_v6 }
  0x3b   :  { %2165 = vmatpush3.bf16.msra.mxu0 %v2718_v1  ;;  %2173 = vmatpush3.bf16.msra.mxu1 %v2720_v2 }
  0x3c   :  { %2166 = vmatprep.subr.bf16.mxu0 %v2644_v0  ;;  %2174 = vmatprep.subr.bf16.mxu1 %v2644_v0 }
  0x3d   :  { %2168 = vmatprep.mubr.msk.bf16.mxu0 %vm2645_vm1, %v2644_v0  ;;  %2176 = vmatprep.mubr.msk.bf16.mxu1 %vm2645_vm1, %v2644_v0 }
  0x3f   :  { %2167 = vmatpush3.bf16.msra.mxu0 %v2723_v3  ;;  %2175 = vmatpush3.bf16.msra.mxu1 %v2727_v4 }
  0x40   :  { %2180 = vmatprep.subr.bf16.mxu0 %v2644_v0  ;;  %2188 = vmatprep.subr.bf16.mxu1 %v2644_v0 }
 0x105   :  { %v135_v14 = vpop.f32.mrb[0].mxu0  ;;  %v188_v16 = vpop.f32.mrb[0].mxu1 }
 0x106   :  { %v141_v15 = vadd.f32 %v135_v14, %v80_v12  ;;  %v2138_v17 = vpop.f32.mrb[1].mxu0  ;;  %v194_v18 = vadd.f32 %v188_v16, %v81_v13  ;;  %v2146_v19 = vpop.f32.mrb[1].mxu1 }
 0x107   :  { %v138_v20 = vpop.f32.mrb[2].mxu0  ;;  %v191_v22 = vpop.f32.mrb[2].mxu1 }
 0x108   :  { %v1972_v21 = vmul.f32 -1.442695, %v141_v15  ;;  %v2139_v23 = vpop.f32.mrb[3].mxu0  ;;  %v1973_v24 = vmul.f32 -1.442695, %v194_v18  ;;  %v2147_v25 = vpop.f32.mrb[3].mxu1 }
 0x109   :  { %v336_v15 = vld [vmem:[#allocation5 + $0x30] sm:$0xff] }
 0x10a   :  { %2434 = vpow2.f32 %v1972_v21  ;;  %v337_v21 = vld [vmem:[#allocation5 + $0x38] sm:$0xff] }
 0x10b   :  { %2436 = vpow2.f32 %v1973_v24 }
 0x10d   :  { %v241_v27 = vpop.f32.mrb[4].mxu0  ;;  %v294_v30 = vpop.f32.mrb[4].mxu1 }
 0x10e   :  { %v247_v28 = vadd.f32 %v241_v27, %v82_v26  ;;  %v2154_v31 = vpop.f32.mrb[5].mxu0  ;;  %v2162_v32 = vpop.f32.mrb[5].mxu1  ;;  %v300_v37 = vadd.f32 %v294_v30, %v83_v29 }
 0x10f   :  { %v244_v33 = vpop.f32.mrb[6].mxu0  ;;  %v297_v35 = vpop.f32.mrb[6].mxu1 }
 0x110   :  { %v1974_v34 = vmul.f32 -1.442695, %v247_v28  ;;  %v2155_v36 = vpop.f32.mrb[7].mxu0  ;;  %v2163_v38 = vpop.f32.mrb[7].mxu1 }
 0x112   :  { %2438 = vpow2.f32 %v1974_v34 }
 0x113   :  { %2440 = vtanh.f32 %v300_v37 }
 0x114   :  { %v2435_v39 = vpop.eup %2434 }
 0x115   :  { %v2437_v40 = vpop.eup %2436  ;;  %v304_v41 = vadd.f32 1.0, %v2435_v39 }
 0x116   :  { %v310_v42 = vadd.f32 1.0, %v2437_v40  ;;  %v79_v40 = vld [vmem:[#allocation4] sm:$0xff] }
 0x117   :  { %2442 = vrcp.f32 %v304_v41 }
 0x118   :  { %2444 = vrcp.f32 %v310_v42 }
 0x11c   :  { %v2439_v43 = vpop.eup %2438 }
 0x11d   :  { %v2441_v44 = vpop.eup %2440  ;;  %v316_v47 = vadd.f32 1.0, %v2439_v43 }
 0x11f   :  { %2446 = vrcp.f32 %v316_v47  ;;  %v539_v47 = vld [vmem:[#allocation5 + $0x40] sm:$0xff] }
 0x121   :  { %v2443_v46 = vpop.eup %2442 }
 0x122   :  { %v2445_v48 = vpop.eup %2444  ;;  %v321_v49 = vmul.f32 %v2443_v46, %v2441_v44 }
 0x123   :  { %v320_v50 = vmul.f32 %v2445_v48, %v78_v45  ;;  %v540_v48 = vld [vmem:[#allocation5 + $0x48] sm:$0xff] }
 0x125   :  { %v2771_v51 = vadd.f32 %v321_v49, %v320_v50 }
 0x127   :  { %2448 = vtanh.f32 %v2771_v51 }
 0x129   :  { %v2447_v52 = vpop.eup %2446 }
 0x131   :  { %v2449_v53 = vpop.eup %2448 }
 0x132   :  { %v2774_v54 = vmul.f32 %v2449_v53, %v2447_v52 }
 0x134   :  { %v338_v55 = vpack.c.bf16 %v2774_v54, %v2774_v54  ;;  %v332_v43 = vmax.f32 %v79_v40, %v2774_v54 }
 0x136   :  { %2169 = vmatmul.mubr.msk.bf16.vlgmr.msra.gmra.mrb[8].mxu0 %vm57_vm0, %v338_v55  ;;  %2177 = vmatmul.mubr.msk.bf16.vlgmr.msra.gmra.mrb[8].mxu1 %vm57_vm0, %v338_v55 }
 0x137   :  { %2181 = vmatpush3.bf16.msra.mxu0 %v2731_v7  ;;  %2189 = vmatpush3.bf16.msra.mxu1 %v2735_v8 }
 0x138   :  { %2182 = vmatprep.subr.bf16.mxu0 %v2644_v0  ;;  %2190 = vmatprep.subr.bf16.mxu1 %v2644_v0 }
 0x139   :  { %2184 = vmatprep.mubr.msk.bf16.mxu0 %vm2645_vm1, %v2644_v0  ;;  %2192 = vmatprep.mubr.msk.bf16.mxu1 %vm2645_vm1, %v2644_v0 }
 0x13b   :  { %2183 = vmatpush3.bf16.msra.mxu0 %v2741_v9  ;;  %2191 = vmatpush3.bf16.msra.mxu1 %v2745_v10 }
 0x13c   :  { %2196 = vmatprep.subr.bf16.mxu0 %v2644_v0  ;;  %2204 = vmatprep.subr.bf16.mxu1 %v2644_v0 }
 0x13e   :  { %2185 = vmatmul.mubr.msk.bf16.vlgmr.msra.gmra.mrb[12].mxu0 %vm57_vm0, %v338_v55  ;;  %2193 = vmatmul.mubr.msk.bf16.vlgmr.msra.gmra.mrb[12].mxu1 %vm57_vm0, %v338_v55 }
 0x13f   :  { %2197 = vmatpush3.bf16.msra.mxu0 %v2718_v1  ;;  %2205 = vmatpush3.bf16.msra.mxu1 %v2720_v2 }
 0x140   :  { %2198 = vmatprep.subr.bf16.mxu0 %v2644_v0  ;;  %2206 = vmatprep.subr.bf16.mxu1 %v2644_v0 }
 0x141   :  { %2200 = vmatprep.mubr.msk.bf16.mxu0 %vm2645_vm1, %v2644_v0  ;;  %2208 = vmatprep.mubr.msk.bf16.mxu1 %vm2645_vm1, %v2644_v0 }
 0x143   :  { %2199 = vmatpush3.bf16.msra.mxu0 %v2723_v3  ;;  %2207 = vmatpush3.bf16.msra.mxu1 %v2727_v4 }
 0x144   :  { %2212 = vmatprep.subr.bf16.mxu0 %v2644_v0  ;;  %2220 = vmatprep.subr.bf16.mxu1 %v2644_v0 }
 0x209   :  { %v376_v58 = vpop.f32.mrb[8].mxu0  ;;  %v417_v59 = vpop.f32.mrb[8].mxu1 }
 0x20a   :  { %v382_v60 = vadd.f32 %v376_v58, %v334_v56  ;;  %v423_v61 = vadd.f32 %v417_v59, %v335_v57  ;;  %v2170_v62 = vpop.f32.mrb[9].mxu0  ;;  %v2178_v63 = vpop.f32.mrb[9].mxu1 }
 0x20b   :  { %v379_v5 = vpop.f32.mrb[10].mxu0  ;;  %v420_v6 = vpop.f32.mrb[10].mxu1 }
 0x20c   :  { %v1979_v11 = vmul.f32 -1.442695, %v382_v60  ;;  %v1980_v12 = vmul.f32 -1.442695, %v423_v61  ;;  %v2171_v13 = vpop.f32.mrb[11].mxu0  ;;  %v2179_v14 = vpop.f32.mrb[11].mxu1 }
 0x20d   :  { %v541_v61 = vld [vmem:[#allocation5 + $0x50] sm:$0xff] }
 0x20e   :  { %2450 = vpow2.f32 %v1979_v11 }
 0x20f   :  { %2452 = vpow2.f32 %v1980_v12  ;;  %v542_v12 = vld [vmem:[#allocation5 + $0x58] sm:$0xff] }
 0x211   :  { %v458_v16 = vpop.f32.mrb[12].mxu0  ;;  %v499_v17 = vpop.f32.mrb[12].mxu1 }
 0x212   :  { %v464_v18 = vadd.f32 %v458_v16, %v336_v15  ;;  %v2186_v19 = vpop.f32.mrb[13].mxu0  ;;  %v2194_v20 = vpop.f32.mrb[13].mxu1  ;;  %v505_v27 = vadd.f32 %v499_v17, %v337_v21 }
 0x213   :  { %v461_v22 = vpop.f32.mrb[14].mxu0  ;;  %v502_v23 = vpop.f32.mrb[14].mxu1 }
 0x214   :  { %v2187_v24 = vpop.f32.mrb[15].mxu0  ;;  %v2195_v25 = vpop.f32.mrb[15].mxu1  ;;  %v1981_v26 = vmul.f32 -1.442695, %v464_v18 }
 0x216   :  { %2454 = vpow2.f32 %v1981_v26 }
 0x217   :  { %2456 = vtanh.f32 %v505_v27 }
 0x218   :  { %v2451_v28 = vpop.eup %2450 }
 0x219   :  { %v2453_v29 = vpop.eup %2452  ;;  %v509_v30 = vadd.f32 1.0, %v2451_v28 }
 0x21a   :  { %v515_v31 = vadd.f32 1.0, %v2453_v29 }
 0x21b   :  { %2458 = vrcp.f32 %v509_v30 }
 0x21c   :  { %2460 = vrcp.f32 %v515_v31 }
 0x220   :  { %v2455_v32 = vpop.eup %2454 }
 0x221   :  { %v2457_v33 = vpop.eup %2456  ;;  %v521_v36 = vadd.f32 1.0, %v2455_v32 }
 0x223   :  { %2462 = vrcp.f32 %v521_v36  ;;  %v744_v36 = vld [vmem:[#allocation5 + $0x60] sm:$0xff] }
 0x225   :  { %v2459_v34 = vpop.eup %2458 }
 0x226   :  { %v2461_v35 = vpop.eup %2460  ;;  %v526_v37 = vmul.f32 %v2459_v34, %v2457_v33 }
 0x227   :  { %v525_v38 = vmul.f32 %v2461_v35, %v2771_v51 }
 0x229   :  { %v2807_v39 = vadd.f32 %v526_v37, %v525_v38  ;;  %v745_v37 = vld [vmem:[#allocation5 + $0x68] sm:$0xff] }
 0x22b   :  { %2464 = vtanh.f32 %v2807_v39 }
 0x22d   :  { %v2463_v41 = vpop.eup %2462 }
 0x235   :  { %v2465_v42 = vpop.eup %2464 }
 0x236   :  { %v529_v44 = vmul.f32 %v2465_v42, %v2463_v41 }
 0x238   :  { %v2811_v45 = vmax.f32 %v332_v43, %v529_v44  ;;  %v543_v46 = vpack.c.bf16 %v529_v44, %v529_v44 }
 0x23a   :  { %2201 = vmatmul.mubr.msk.bf16.vlgmr.msra.gmra.mrb[16].mxu0 %vm57_vm0, %v543_v46  ;;  %2209 = vmatmul.mubr.msk.bf16.vlgmr.msra.gmra.mrb[16].mxu1 %vm57_vm0, %v543_v46 }
 0x23b   :  { %2213 = vmatpush3.bf16.msra.mxu0 %v2731_v7  ;;  %2221 = vmatpush3.bf16.msra.mxu1 %v2735_v8 }
 0x23c   :  { %2214 = vmatprep.subr.bf16.mxu0 %v2644_v0  ;;  %2222 = vmatprep.subr.bf16.mxu1 %v2644_v0 }
 0x23d   :  { %2216 = vmatprep.mubr.msk.bf16.mxu0 %vm2645_vm1, %v2644_v0  ;;  %2224 = vmatprep.mubr.msk.bf16.mxu1 %vm2645_vm1, %v2644_v0 }
 0x23f   :  { %2215 = vmatpush3.bf16.msra.mxu0 %v2741_v9  ;;  %2223 = vmatpush3.bf16.msra.mxu1 %v2745_v10 }
 0x240   :  { %2228 = vmatprep.subr.bf16.mxu0 %v2644_v0  ;;  %2236 = vmatprep.subr.bf16.mxu1 %v2644_v0 }
 0x242   :  { %2217 = vmatmul.mubr.msk.bf16.vlgmr.msra.gmra.mrb[20].mxu0 %vm57_vm0, %v543_v46  ;;  %2225 = vmatmul.mubr.msk.bf16.vlgmr.msra.gmra.mrb[20].mxu1 %vm57_vm0, %v543_v46 }
 0x243   :  { %2229 = vmatpush3.bf16.msra.mxu0 %v2718_v1  ;;  %2237 = vmatpush3.bf16.msra.mxu1 %v2720_v2 }
 0x244   :  { %2230 = vmatprep.subr.bf16.mxu0 %v2644_v0  ;;  %2238 = vmatprep.subr.bf16.mxu1 %v2644_v0 }
 0x245   :  { %2232 = vmatprep.mubr.msk.bf16.mxu0 %vm2645_vm1, %v2644_v0  ;;  %2240 = vmatprep.mubr.msk.bf16.mxu1 %vm2645_vm1, %v2644_v0 }
 0x247   :  { %2231 = vmatpush3.bf16.msra.mxu0 %v2723_v3  ;;  %2239 = vmatpush3.bf16.msra.mxu1 %v2727_v4 }
 0x248   :  { %2244 = vmatprep.subr.bf16.mxu0 %v2644_v0  ;;  %2252 = vmatprep.subr.bf16.mxu1 %v2644_v0 }
 0x30d   :  { %v581_v49 = vpop.f32.mrb[16].mxu0  ;;  %v622_v50 = vpop.f32.mrb[16].mxu1 }
 0x30e   :  { %v587_v51 = vadd.f32 %v581_v49, %v539_v47  ;;  %v628_v52 = vadd.f32 %v622_v50, %v540_v48  ;;  %v2202_v53 = vpop.f32.mrb[17].mxu0  ;;  %v2210_v54 = vpop.f32.mrb[17].mxu1 }
 0x30f   :  { %v584_v55 = vpop.f32.mrb[18].mxu0  ;;  %v625_v56 = vpop.f32.mrb[18].mxu1 }
 0x310   :  { %v1986_v57 = vmul.f32 -1.442695, %v587_v51  ;;  %v1987_v58 = vmul.f32 -1.442695, %v628_v52  ;;  %v2203_v59 = vpop.f32.mrb[19].mxu0  ;;  %v2211_v60 = vpop.f32.mrb[19].mxu1 }
 0x311   :  { %v746_v51 = vld [vmem:[#allocation5 + $0x70] sm:$0xff] }
 0x312   :  { %2466 = vpow2.f32 %v1986_v57  ;;  %v747_v57 = vld [vmem:[#allocation5 + $0x78] sm:$0xff] }
 0x313   :  { %2468 = vpow2.f32 %v1987_v58 }
 0x315   :  { %v663_v62 = vpop.f32.mrb[20].mxu0  ;;  %v704_v63 = vpop.f32.mrb[20].mxu1 }
 0x316   :  { %v669_v5 = vadd.f32 %v663_v62, %v541_v61  ;;  %v2218_v6 = vpop.f32.mrb[21].mxu0  ;;  %v2226_v11 = vpop.f32.mrb[21].mxu1  ;;  %v710_v18 = vadd.f32 %v704_v63, %v542_v12 }
 0x317   :  { %v666_v13 = vpop.f32.mrb[22].mxu0  ;;  %v707_v14 = vpop.f32.mrb[22].mxu1 }
 0x318   :  { %v2219_v15 = vpop.f32.mrb[23].mxu0  ;;  %v2227_v16 = vpop.f32.mrb[23].mxu1  ;;  %v1988_v17 = vmul.f32 -1.442695, %v669_v5 }
 0x31a   :  { %2470 = vpow2.f32 %v1988_v17 }
 0x31b   :  { %2472 = vtanh.f32 %v710_v18 }
 0x31c   :  { %v2467_v19 = vpop.eup %2466 }
 0x31d   :  { %v2469_v20 = vpop.eup %2468  ;;  %v714_v21 = vadd.f32 1.0, %v2467_v19 }
 0x31e   :  { %v720_v22 = vadd.f32 1.0, %v2469_v20 }
 0x31f   :  { %2474 = vrcp.f32 %v714_v21 }
 0x320   :  { %2476 = vrcp.f32 %v720_v22 }
 0x324   :  { %v2471_v23 = vpop.eup %2470 }
 0x325   :  { %v2473_v24 = vpop.eup %2472  ;;  %v726_v27 = vadd.f32 1.0, %v2471_v23 }
 0x327   :  { %2478 = vrcp.f32 %v726_v27 }
 0x329   :  { %v2475_v25 = vpop.eup %2474 }
 0x32a   :  { %v2477_v26 = vpop.eup %2476  ;;  %v731_v28 = vmul.f32 %v2475_v25, %v2473_v24 }
 0x32b   :  { %v730_v29 = vmul.f32 %v2477_v26, %v2807_v39  ;;  %v950_v26 = vld [vmem:[#allocation5 + $0x88] sm:$0xff] }
 0x32d   :  { %v2842_v30 = vadd.f32 %v731_v28, %v730_v29 }
 0x32f   :  { %2480 = vtanh.f32 %v2842_v30 }
 0x331   :  { %v2479_v31 = vpop.eup %2478 }
 0x339   :  { %v2481_v32 = vpop.eup %2480 }
 0x33a   :  { %v2845_v33 = vmul.f32 %v2481_v32, %v2479_v31 }
 0x33c   :  { %v742_v34 = vmax.f32 %v2811_v45, %v2845_v33  ;;  %v748_v35 = vpack.c.bf16 %v2845_v33, %v2845_v33  ;;  %v949_v45 = vld [vmem:[#allocation5 + $0x80] sm:$0xff] }
 0x33e   :  { %2233 = vmatmul.mubr.msk.bf16.vlgmr.msra.gmra.mrb[24].mxu0 %vm57_vm0, %v748_v35  ;;  %2241 = vmatmul.mubr.msk.bf16.vlgmr.msra.gmra.mrb[24].mxu1 %vm57_vm0, %v748_v35 }
 0x33f   :  { %2245 = vmatpush3.bf16.msra.mxu0 %v2731_v7  ;;  %2253 = vmatpush3.bf16.msra.mxu1 %v2735_v8 }
 0x340   :  { %2246 = vmatprep.subr.bf16.mxu0 %v2644_v0  ;;  %2254 = vmatprep.subr.bf16.mxu1 %v2644_v0 }
 0x341   :  { %2248 = vmatprep.mubr.msk.bf16.mxu0 %vm2645_vm1, %v2644_v0  ;;  %2256 = vmatprep.mubr.msk.bf16.mxu1 %vm2645_vm1, %v2644_v0 }
 0x343   :  { %2247 = vmatpush3.bf16.msra.mxu0 %v2741_v9  ;;  %2255 = vmatpush3.bf16.msra.mxu1 %v2745_v10 }
 0x344   :  { %2260 = vmatprep.subr.bf16.mxu0 %v2644_v0  ;;  %2268 = vmatprep.subr.bf16.mxu1 %v2644_v0 }
 0x346   :  { %2249 = vmatmul.mubr.msk.bf16.vlgmr.msra.gmra.mrb[28].mxu0 %vm57_vm0, %v748_v35  ;;  %2257 = vmatmul.mubr.msk.bf16.vlgmr.msra.gmra.mrb[28].mxu1 %vm57_vm0, %v748_v35 }
 0x347   :  { %2261 = vmatpush3.bf16.msra.mxu0 %v2718_v1  ;;  %2269 = vmatpush3.bf16.msra.mxu1 %v2720_v2 }
 0x348   :  { %2262 = vmatprep.subr.bf16.mxu0 %v2644_v0  ;;  %2270 = vmatprep.subr.bf16.mxu1 %v2644_v0 }
 0x349   :  { %2264 = vmatprep.mubr.msk.bf16.mxu0 %vm2645_vm1, %v2644_v0  ;;  %2272 = vmatprep.mubr.msk.bf16.mxu1 %vm2645_vm1, %v2644_v0 }
 0x34b   :  { %2263 = vmatpush3.bf16.msra.mxu0 %v2723_v3  ;;  %2271 = vmatpush3.bf16.msra.mxu1 %v2727_v4 }
 0x34c   :  { %2276 = vmatprep.subr.bf16.mxu0 %v2644_v0  ;;  %2284 = vmatprep.subr.bf16.mxu1 %v2644_v0 }
 0x411   :  { %v786_v38 = vpop.f32.mrb[24].mxu0  ;;  %v827_v39 = vpop.f32.mrb[24].mxu1 }
 0x412   :  { %v792_v40 = vadd.f32 %v786_v38, %v744_v36  ;;  %v833_v41 = vadd.f32 %v827_v39, %v745_v37  ;;  %v2234_v42 = vpop.f32.mrb[25].mxu0  ;;  %v2242_v43 = vpop.f32.mrb[25].mxu1  ;;  %v951_v39 = vld [vmem:[#allocation5 + $0x90] sm:$0xff] }
 0x413   :  { %v789_v44 = vpop.f32.mrb[26].mxu0  ;;  %v830_v46 = vpop.f32.mrb[26].mxu1 }
 0x414   :  { %v1993_v47 = vmul.f32 -1.442695, %v792_v40  ;;  %v1994_v48 = vmul.f32 -1.442695, %v833_v41  ;;  %v2235_v49 = vpop.f32.mrb[27].mxu0  ;;  %v2243_v50 = vpop.f32.mrb[27].mxu1 }
 0x415   :  { %v952_v46 = vld [vmem:[#allocation5 + $0x98] sm:$0xff] }
 0x416   :  { %2482 = vpow2.f32 %v1993_v47 }
 0x417   :  { %2484 = vpow2.f32 %v1994_v48 }
 0x419   :  { %v868_v52 = vpop.f32.mrb[28].mxu0  ;;  %v909_v53 = vpop.f32.mrb[28].mxu1 }
 0x41a   :  { %v874_v54 = vadd.f32 %v868_v52, %v746_v51  ;;  %v2250_v55 = vpop.f32.mrb[29].mxu0  ;;  %v2258_v56 = vpop.f32.mrb[29].mxu1  ;;  %v915_v63 = vadd.f32 %v909_v53, %v747_v57 }
 0x41b   :  { %v871_v58 = vpop.f32.mrb[30].mxu0  ;;  %v912_v59 = vpop.f32.mrb[30].mxu1 }
 0x41c   :  { %v2251_v60 = vpop.f32.mrb[31].mxu0  ;;  %v2259_v61 = vpop.f32.mrb[31].mxu1  ;;  %v1995_v62 = vmul.f32 -1.442695, %v874_v54 }
 0x41e   :  { %2486 = vpow2.f32 %v1995_v62 }
 0x41f   :  { %2488 = vtanh.f32 %v915_v63 }
 0x420   :  { %v2483_v5 = vpop.eup %2482 }
 0x421   :  { %v2485_v6 = vpop.eup %2484  ;;  %v919_v11 = vadd.f32 1.0, %v2483_v5 }
 0x422   :  { %v925_v12 = vadd.f32 1.0, %v2485_v6 }
 0x423   :  { %2490 = vrcp.f32 %v919_v11 }
 0x424   :  { %2492 = vrcp.f32 %v925_v12 }
 0x428   :  { %v2487_v13 = vpop.eup %2486 }
 0x429   :  { %v2489_v14 = vpop.eup %2488  ;;  %v931_v17 = vadd.f32 1.0, %v2487_v13 }
 0x42b   :  { %2494 = vrcp.f32 %v931_v17 }
 0x42d   :  { %v2491_v15 = vpop.eup %2490 }
 0x42e   :  { %v2493_v16 = vpop.eup %2492  ;;  %v936_v18 = vmul.f32 %v2491_v15, %v2489_v14  ;;  %v1154_v15 = vld [vmem:[#allocation5 + $0xa0] sm:$0xff] }
 0x42f   :  { %v935_v19 = vmul.f32 %v2493_v16, %v2842_v30  ;;  %v1155_v16 = vld [vmem:[#allocation5 + $0xa8] sm:$0xff] }
 0x431   :  { %v2880_v20 = vadd.f32 %v936_v18, %v935_v19 }
 0x433   :  { %2496 = vtanh.f32 %v2880_v20 }
 0x435   :  { %v2495_v21 = vpop.eup %2494 }
 0x43d   :  { %v2497_v22 = vpop.eup %2496 }
 0x43e   :  { %v939_v23 = vmul.f32 %v2497_v22, %v2495_v21 }
 0x440   :  { %v2886_v24 = vmax.f32 %v742_v34, %v939_v23  ;;  %v953_v25 = vpack.c.bf16 %v939_v23, %v939_v23 }
 0x442   :  { %2265 = vmatmul.mubr.msk.bf16.vlgmr.msra.gmra.mrb[32].mxu0 %vm57_vm0, %v953_v25  ;;  %2273 = vmatmul.mubr.msk.bf16.vlgmr.msra.gmra.mrb[32].mxu1 %vm57_vm0, %v953_v25 }
 0x443   :  { %2277 = vmatpush3.bf16.msra.mxu0 %v2731_v7  ;;  %2285 = vmatpush3.bf16.msra.mxu1 %v2735_v8 }
 0x444   :  { %2278 = vmatprep.subr.bf16.mxu0 %v2644_v0  ;;  %2286 = vmatprep.subr.bf16.mxu1 %v2644_v0 }
 0x445   :  { %2280 = vmatprep.mubr.msk.bf16.mxu0 %vm2645_vm1, %v2644_v0  ;;  %2288 = vmatprep.mubr.msk.bf16.mxu1 %vm2645_vm1, %v2644_v0 }
 0x447   :  { %2279 = vmatpush3.bf16.msra.mxu0 %v2741_v9  ;;  %2287 = vmatpush3.bf16.msra.mxu1 %v2745_v10 }
 0x448   :  { %2292 = vmatprep.subr.bf16.mxu0 %v2644_v0  ;;  %2300 = vmatprep.subr.bf16.mxu1 %v2644_v0 }
 0x44a   :  { %2281 = vmatmul.mubr.msk.bf16.vlgmr.msra.gmra.mrb[36].mxu0 %vm57_vm0, %v953_v25  ;;  %2289 = vmatmul.mubr.msk.bf16.vlgmr.msra.gmra.mrb[36].mxu1 %vm57_vm0, %v953_v25 }
 0x44b   :  { %2293 = vmatpush3.bf16.msra.mxu0 %v2718_v1  ;;  %2301 = vmatpush3.bf16.msra.mxu1 %v2720_v2 }
 0x44c   :  { %2294 = vmatprep.subr.bf16.mxu0 %v2644_v0  ;;  %2302 = vmatprep.subr.bf16.mxu1 %v2644_v0 }
 0x44d   :  { %2296 = vmatprep.mubr.msk.bf16.mxu0 %vm2645_vm1, %v2644_v0  ;;  %2304 = vmatprep.mubr.msk.bf16.mxu1 %vm2645_vm1, %v2644_v0 }
 0x44f   :  { %2295 = vmatpush3.bf16.msra.mxu0 %v2723_v3  ;;  %2303 = vmatpush3.bf16.msra.mxu1 %v2727_v4 }
 0x450   :  { %2308 = vmatprep.subr.bf16.mxu0 %v2644_v0  ;;  %2316 = vmatprep.subr.bf16.mxu1 %v2644_v0 }
 0x515   :  { %v991_v27 = vpop.f32.mrb[32].mxu0  ;;  %v1032_v28 = vpop.f32.mrb[32].mxu1 }
 0x516   :  { %v997_v29 = vadd.f32 %v991_v27, %v949_v45  ;;  %v1038_v30 = vadd.f32 %v1032_v28, %v950_v26  ;;  %v2266_v31 = vpop.f32.mrb[33].mxu0  ;;  %v2274_v32 = vpop.f32.mrb[33].mxu1 }
 0x517   :  { %v994_v33 = vpop.f32.mrb[34].mxu0  ;;  %v1035_v34 = vpop.f32.mrb[34].mxu1 }
 0x518   :  { %v2000_v35 = vmul.f32 -1.442695, %v997_v29  ;;  %v2001_v36 = vmul.f32 -1.442695, %v1038_v30  ;;  %v2267_v37 = vpop.f32.mrb[35].mxu0  ;;  %v2275_v38 = vpop.f32.mrb[35].mxu1 }
 0x519   :  { %v1156_v29 = vld [vmem:[#allocation5 + $0xb0] sm:$0xff] }
 0x51a   :  { %2498 = vpow2.f32 %v2000_v35  ;;  %v1157_v35 = vld [vmem:[#allocation5 + $0xb8] sm:$0xff] }
 0x51b   :  { %2500 = vpow2.f32 %v2001_v36 }
 0x51d   :  { %v1073_v40 = vpop.f32.mrb[36].mxu0  ;;  %v1114_v41 = vpop.f32.mrb[36].mxu1 }
 0x51e   :  { %v1079_v42 = vadd.f32 %v1073_v40, %v951_v39  ;;  %v2282_v43 = vpop.f32.mrb[37].mxu0  ;;  %v2290_v44 = vpop.f32.mrb[37].mxu1  ;;  %v1120_v52 = vadd.f32 %v1114_v41, %v952_v46 }
 0x51f   :  { %v1076_v47 = vpop.f32.mrb[38].mxu0  ;;  %v1117_v48 = vpop.f32.mrb[38].mxu1 }
 0x520   :  { %v2283_v49 = vpop.f32.mrb[39].mxu0  ;;  %v2291_v50 = vpop.f32.mrb[39].mxu1  ;;  %v2002_v51 = vmul.f32 -1.442695, %v1079_v42 }
 0x522   :  { %2502 = vpow2.f32 %v2002_v51 }
 0x523   :  { %2504 = vtanh.f32 %v1120_v52 }
 0x524   :  { %v2499_v53 = vpop.eup %2498 }
 0x525   :  { %v2501_v54 = vpop.eup %2500  ;;  %v1124_v55 = vadd.f32 1.0, %v2499_v53 }
 0x526   :  { %v1130_v56 = vadd.f32 1.0, %v2501_v54 }
 0x527   :  { %2506 = vrcp.f32 %v1124_v55 }
 0x528   :  { %2508 = vrcp.f32 %v1130_v56 }
 0x52c   :  { %v2503_v57 = vpop.eup %2502 }
 0x52d   :  { %v2505_v58 = vpop.eup %2504  ;;  %v1136_v61 = vadd.f32 1.0, %v2503_v57 }
 0x52f   :  { %2510 = vrcp.f32 %v1136_v61 }
 0x531   :  { %v2507_v59 = vpop.eup %2506 }
 0x532   :  { %v2509_v60 = vpop.eup %2508  ;;  %v1141_v62 = vmul.f32 %v2507_v59, %v2505_v58 }
 0x533   :  { %v1140_v63 = vmul.f32 %v2509_v60, %v2880_v20 }
 0x535   :  { %v2917_v5 = vadd.f32 %v1141_v62, %v1140_v63 }
 0x537   :  { %2512 = vtanh.f32 %v2917_v5 }
 0x539   :  { %v2511_v6 = vpop.eup %2510 }
 0x541   :  { %v2513_v11 = vpop.eup %2512 }
 0x542   :  { %v2920_v12 = vmul.f32 %v2513_v11, %v2511_v6 }
 0x544   :  { %v1152_v13 = vmax.f32 %v2886_v24, %v2920_v12  ;;  %v1158_v14 = vpack.c.bf16 %v2920_v12, %v2920_v12 }
 0x546   :  { %2297 = vmatmul.mubr.msk.bf16.vlgmr.msra.gmra.mrb[40].mxu0 %vm57_vm0, %v1158_v14  ;;  %2305 = vmatmul.mubr.msk.bf16.vlgmr.msra.gmra.mrb[40].mxu1 %vm57_vm0, %v1158_v14 }
 0x547   :  { %2309 = vmatpush3.bf16.msra.mxu0 %v2731_v7  ;;  %2317 = vmatpush3.bf16.msra.mxu1 %v2735_v8 }
 0x548   :  { %2310 = vmatprep.subr.bf16.mxu0 %v2644_v0  ;;  %2318 = vmatprep.subr.bf16.mxu1 %v2644_v0 }
 0x549   :  { %2312 = vmatprep.mubr.msk.bf16.mxu0 %vm2645_vm1, %v2644_v0  ;;  %2320 = vmatprep.mubr.msk.bf16.mxu1 %vm2645_vm1, %v2644_v0 }
 0x54b   :  { %2311 = vmatpush3.bf16.msra.mxu0 %v2741_v9  ;;  %2319 = vmatpush3.bf16.msra.mxu1 %v2745_v10 }
 0x54c   :  { %2324 = vmatprep.subr.bf16.mxu0 %v2644_v0  ;;  %2332 = vmatprep.subr.bf16.mxu1 %v2644_v0 }
 0x54e   :  { %2313 = vmatmul.mubr.msk.bf16.vlgmr.msra.gmra.mrb[44].mxu0 %vm57_vm0, %v1158_v14  ;;  %2321 = vmatmul.mubr.msk.bf16.vlgmr.msra.gmra.mrb[44].mxu1 %vm57_vm0, %v1158_v14 }
 0x54f   :  { %2325 = vmatpush3.bf16.msra.mxu0 %v2718_v1  ;;  %2333 = vmatpush3.bf16.msra.mxu1 %v2720_v2 }
 0x550   :  { %2326 = vmatprep.subr.bf16.mxu0 %v2644_v0  ;;  %2334 = vmatprep.subr.bf16.mxu1 %v2644_v0 }
 0x551   :  { %2328 = vmatprep.mubr.msk.bf16.mxu0 %vm2645_vm1, %v2644_v0  ;;  %2336 = vmatprep.mubr.msk.bf16.mxu1 %vm2645_vm1, %v2644_v0 }
 0x553   :  { %2327 = vmatpush3.bf16.msra.mxu0 %v2723_v3  ;;  %2335 = vmatpush3.bf16.msra.mxu1 %v2727_v4 }
 0x554   :  { %2340 = vmatprep.subr.bf16.mxu0 %v2644_v0  ;;  %2348 = vmatprep.subr.bf16.mxu1 %v2644_v0 }
 0x619   :  { %v1196_v17 = vpop.f32.mrb[40].mxu0  ;;  %v1237_v18 = vpop.f32.mrb[40].mxu1 }
 0x61a   :  { %v1202_v19 = vadd.f32 %v1196_v17, %v1154_v15  ;;  %v1243_v20 = vadd.f32 %v1237_v18, %v1155_v16  ;;  %v2298_v21 = vpop.f32.mrb[41].mxu0  ;;  %v2306_v22 = vpop.f32.mrb[41].mxu1  ;;  %v1362_v16 = vld [vmem:[#allocation5 + $0xd8] sm:$0xff] }
 0x61b   :  { %v1199_v23 = vpop.f32.mrb[42].mxu0  ;;  %v1240_v25 = vpop.f32.mrb[42].mxu1 }
 0x61c   :  { %v2007_v45 = vmul.f32 -1.442695, %v1202_v19  ;;  %v2008_v26 = vmul.f32 -1.442695, %v1243_v20  ;;  %v2299_v27 = vpop.f32.mrb[43].mxu0  ;;  %v2307_v28 = vpop.f32.mrb[43].mxu1 }
 0x61e   :  { %2514 = vpow2.f32 %v2007_v45 }
 0x61f   :  { %2516 = vpow2.f32 %v2008_v26 }
 0x621   :  { %v1278_v30 = vpop.f32.mrb[44].mxu0  ;;  %v1319_v31 = vpop.f32.mrb[44].mxu1 }
 0x622   :  { %v1284_v32 = vadd.f32 %v1278_v30, %v1156_v29  ;;  %v2314_v33 = vpop.f32.mrb[45].mxu0  ;;  %v2322_v34 = vpop.f32.mrb[45].mxu1  ;;  %v1325_v41 = vadd.f32 %v1319_v31, %v1157_v35 }
 0x623   :  { %v1281_v36 = vpop.f32.mrb[46].mxu0  ;;  %v1322_v37 = vpop.f32.mrb[46].mxu1 }
 0x624   :  { %v2315_v38 = vpop.f32.mrb[47].mxu0  ;;  %v2323_v39 = vpop.f32.mrb[47].mxu1  ;;  %v2009_v40 = vmul.f32 -1.442695, %v1284_v32 }
 0x626   :  { %2518 = vpow2.f32 %v2009_v40  ;;  %v2562_v40 = vld [vmem:[#allocation8 + $0x20] sm:$0xff]  }
 0x627   :  { %2520 = vtanh.f32 %v1325_v41  ;;  %v2563_v41 = vld [vmem:[#allocation8 + $0x30] sm:$0xff]  }
 0x628   :  { %v2515_v42 = vpop.eup %2514 }
 0x629   :  { %v2517_v43 = vpop.eup %2516  ;;  %v1329_v44 = vadd.f32 1.0, %v2515_v42  ;;  %v2564_v42 = vld [vmem:[#allocation8 + $0x28] sm:$0xff]  }
 0x62a   :  { %v1335_v46 = vadd.f32 1.0, %v2517_v43  ;;  %v2565_v43 = vld [vmem:[#allocation8 + $0x38] sm:$0xff]  }
 0x62b   :  { %2522 = vrcp.f32 %v1329_v44  ;;  %v1776_v44 = vld [vmem:[%s3061_s2] sm:$0xff] }
 0x62c   :  { %2524 = vrcp.f32 %v1335_v46  ;;  %v1777_v46 = vld [vmem:[%s3061_s2 + $0x8] sm:$0xff] }
 0x630   :  { %v2519_v47 = vpop.eup %2518 }
 0x631   :  { %v2521_v48 = vpop.eup %2520  ;;  %v1341_v51 = vadd.f32 1.0, %v2519_v47  ;;  %v1778_v47 = vld [vmem:[%s3061_s2 + $0x10] sm:$0xff] }
 0x633   :  { %2526 = vrcp.f32 %v1341_v51  ;;  %v1860_v51 = vld [vmem:[%s3063_s4] sm:$0xff] }
 0x635   :  { %v2523_v49 = vpop.eup %2522 }
 0x636   :  { %v2525_v50 = vpop.eup %2524  ;;  %v1346_v52 = vmul.f32 %v2523_v49, %v2521_v48  ;;  %v2647_v48 = vmov 0.0|0.0   ;;  %v2407_v49 = vpack.c.bf16 %v1777_v46, %v1776_v44 }
 0x637   :  { %v1345_v53 = vmul.f32 %v2525_v50, %v2917_v5  ;;  %v1779_v50 = vld [vmem:[%s3061_s2 + $0x18] sm:$0xff] }
 0x639   :  { %v2955_v54 = vadd.f32 %v1346_v52, %v1345_v53  ;;  %v1861_v52 = vld [vmem:[%s3063_s4 + $0x8] sm:$0xff] }
 0x63a   :  { %v2413_v53 = vpack.c.bf16 %v1861_v52, %v1860_v51 }
 0x63b   :  { %2528 = vtanh.f32 %v2955_v54 }
 0x63d   :  { %v2527_v55 = vpop.eup %2526 }
 0x645   :  { %v2529_v56 = vpop.eup %2528 }
 0x646   :  { %v1349_v57 = vmul.f32 %v2529_v56, %v2527_v55  ;;  %v1565_v55 = vld [vmem:[#allocation5 + $0xe8] sm:$0xff] }
 0x648   :  { %v2961_v58 = vmax.f32 %v1152_v13, %v1349_v57  ;;  %v1363_v59 = vpack.c.bf16 %v1349_v57, %v1349_v57 }
 0x64a   :  { %2329 = vmatmul.mubr.msk.bf16.vlgmr.msra.gmra.mrb[48].mxu0 %vm57_vm0, %v1363_v59  ;;  %2337 = vmatmul.mubr.msk.bf16.vlgmr.msra.gmra.mrb[48].mxu1 %vm57_vm0, %v1363_v59 }
 0x64b   :  { %2341 = vmatpush3.bf16.msra.mxu0 %v2731_v7  ;;  %2349 = vmatpush3.bf16.msra.mxu1 %v2735_v8 }
 0x64c   :  { %2342 = vmatprep.subr.bf16.mxu0 %v2644_v0  ;;  %2350 = vmatprep.subr.bf16.mxu1 %v2644_v0 }
 0x64d   :  { %2344 = vmatprep.mubr.msk.bf16.mxu0 %vm2645_vm1, %v2644_v0  ;;  %2352 = vmatprep.mubr.msk.bf16.mxu1 %vm2645_vm1, %v2644_v0 }
 0x64f   :  { %2343 = vmatpush3.bf16.msra.mxu0 %v2741_v9  ;;  %2351 = vmatpush3.bf16.msra.mxu1 %v2745_v10 }
 0x650   :  { %2356 = vmatprep.subr.bf16.mxu0 %v2644_v0  ;;  %2364 = vmatprep.subr.bf16.mxu1 %v2644_v0 }
 0x652   :  { %2345 = vmatmul.mubr.msk.bf16.vlgmr.msra.gmra.mrb[52].mxu0 %vm57_vm0, %v1363_v59  ;;  %2353 = vmatmul.mubr.msk.bf16.vlgmr.msra.gmra.mrb[52].mxu1 %vm57_vm0, %v1363_v59 }
 0x653   :  { %2357 = vmatpush3.bf16.msra.mxu0 %v2718_v1  ;;  %2365 = vmatpush3.bf16.msra.mxu1 %v2720_v2  ;;  %v1359_v1 = vld [vmem:[#allocation5 + $0xc0] sm:$0xff]  ;;  %v1360_v2 = vld [vmem:[#allocation5 + $0xc8] sm:$0xff] }
 0x654   :  { %2358 = vmatprep.subr.bf16.mxu0 %v2644_v0  ;;  %2366 = vmatprep.subr.bf16.mxu1 %v2644_v0 }
 0x655   :  { %2360 = vmatprep.mubr.msk.bf16.mxu0 %vm2645_vm1, %v2644_v0  ;;  %2368 = vmatprep.mubr.msk.bf16.mxu1 %vm2645_vm1, %v2644_v0 }
 0x657   :  { %2359 = vmatpush3.bf16.msra.mxu0 %v2723_v3  ;;  %2367 = vmatpush3.bf16.msra.mxu1 %v2727_v4  ;;  %v1361_v4 = vld [vmem:[#allocation5 + $0xd0] sm:$0xff] }
 0x658   :  { %2372 = vmatprep.subr.bf16.mxu0 %v2644_v0  ;;  %2380 = vmatprep.subr.bf16.mxu1 %v2644_v0 }
 0x71d   :  { %v1401_v7 = vpop.f32.mrb[48].mxu0  ;;  %v1442_v8 = vpop.f32.mrb[48].mxu1 }
 0x71e   :  { %v1407_v9 = vadd.f32 %v1401_v7, %v1359_v1  ;;  %v1448_v10 = vadd.f32 %v1442_v8, %v1360_v2  ;;  %v2330_v24 = vpop.f32.mrb[49].mxu0  ;;  %v2338_v60 = vpop.f32.mrb[49].mxu1 }
 0x71f   :  { %v1404_v61 = vpop.f32.mrb[50].mxu0  ;;  %v1445_v62 = vpop.f32.mrb[50].mxu1 }
 0x720   :  { %v2014_v63 = vmul.f32 -1.442695, %v1407_v9  ;;  %v2015_v5 = vmul.f32 -1.442695, %v1448_v10  ;;  %v2331_v6 = vpop.f32.mrb[51].mxu0  ;;  %v2339_v3 = vpop.f32.mrb[51].mxu1 }
 0x721   :  { %v1566_v62 = vld [vmem:[#allocation5 + $0xf0] sm:$0xff] }
 0x722   :  { %2530 = vpow2.f32 %v2014_v63 }
 0x723   :  { %2532 = vpow2.f32 %v2015_v5 }
 0x725   :  { %v1483_v11 = vpop.f32.mrb[52].mxu0  ;;  %v1524_v12 = vpop.f32.mrb[52].mxu1 }
 0x726   :  { %v1489_v13 = vadd.f32 %v1483_v11, %v1361_v4  ;;  %v2346_v14 = vpop.f32.mrb[53].mxu0  ;;  %v2354_v15 = vpop.f32.mrb[53].mxu1  ;;  %v1530_v22 = vadd.f32 %v1524_v12, %v1362_v16  ;;  %v1567_v11 = vld [vmem:[#allocation5 + $0xf8] sm:$0xff] }
 0x727   :  { %v1486_v17 = vpop.f32.mrb[54].mxu0  ;;  %v1527_v18 = vpop.f32.mrb[54].mxu1 }
 0x728   :  { %v2347_v19 = vpop.f32.mrb[55].mxu0  ;;  %v2355_v20 = vpop.f32.mrb[55].mxu1  ;;  %v2016_v21 = vmul.f32 -1.442695, %v1489_v13 }
 0x72a   :  { %2534 = vpow2.f32 %v2016_v21 }
 0x72b   :  { %2536 = vtanh.f32 %v1530_v22 }
 0x72c   :  { %v2531_v23 = vpop.eup %2530 }
 0x72d   :  { %v2533_v25 = vpop.eup %2532  ;;  %v1534_v45 = vadd.f32 1.0, %v2531_v23 }
 0x72e   :  { %v1540_v26 = vadd.f32 1.0, %v2533_v25 }
 0x72f   :  { %2538 = vrcp.f32 %v1534_v45 }
 0x730   :  { %2540 = vrcp.f32 %v1540_v26 }
 0x734   :  { %v2535_v27 = vpop.eup %2534 }
 0x735   :  { %v2537_v28 = vpop.eup %2536  ;;  %v1546_v31 = vadd.f32 1.0, %v2535_v27 }
 0x737   :  { %2542 = vrcp.f32 %v1546_v31 }
 0x739   :  { %v2539_v29 = vpop.eup %2538 }
 0x73a   :  { %v2541_v30 = vpop.eup %2540  ;;  %v1551_v32 = vmul.f32 %v2539_v29, %v2537_v28 }
 0x73b   :  { %v1550_v33 = vmul.f32 %v2541_v30, %v2955_v54  ;;  %v1564_v54 = vld [vmem:[#allocation5 + $0xe0] sm:$0xff] }
 0x73d   :  { %v2992_v34 = vadd.f32 %v1551_v32, %v1550_v33 }
 0x73f   :  { %2544 = vtanh.f32 %v2992_v34 }
 0x741   :  { %v2543_v35 = vpop.eup %2542 }
 0x749   :  { %v2545_v36 = vpop.eup %2544 }
 0x74a   :  { %v2995_v37 = vmul.f32 %v2545_v36, %v2543_v35 }
 0x74c   :  { %v1562_v38 = vmax.f32 %v2961_v58, %v2995_v37  ;;  %v1568_v39 = vpack.c.bf16 %v2995_v37, %v2995_v37  ;;  %v2026_v58 = vld [vmem:[%s3064_s5] ss:$0 sm:$0xff] }
 0x74e   :  { %2361 = vmatmul.mubr.msk.bf16.vlgmr.msra.gmra.mrb[56].mxu0 %vm57_vm0, %v1568_v39  ;;  %2369 = vmatmul.mubr.msk.bf16.vlgmr.msra.gmra.mrb[56].mxu1 %vm57_vm0, %v1568_v39 }
 0x74f   :  { %2373 = vmatpush3.bf16.msra.mxu0 %v2562_v40  ;;  %2381 = vmatpush3.bf16.msra.mxu1 %v2563_v41 }
 0x750   :  { %2374 = vmatprep.subr.bf16.mxu0 %v2644_v0  ;;  %2382 = vmatprep.subr.bf16.mxu1 %v2644_v0 }
 0x751   :  { %2376 = vmatprep.mubr.msk.bf16.mxu0 %vm2645_vm1, %v2644_v0  ;;  %2384 = vmatprep.mubr.msk.bf16.mxu1 %vm2645_vm1, %v2644_v0 }
 0x753   :  { %2375 = vmatpush3.bf16.msra.mxu0 %v2564_v42  ;;  %2383 = vmatpush3.bf16.msra.mxu1 %v2565_v43 }
 0x754   :  { %2406 = vmatprep.subr.bf16.mxu0 %v2647_v48  ;;  %2412 = vmatprep.subr.bf16.mxu1 %v2647_v48 }
 0x756   :  { %2377 = vmatmul.mubr.msk.bf16.vlgmr.msra.gmra.mrb[60].mxu0 %vm57_vm0, %v1568_v39  ;;  %2385 = vmatmul.mubr.msk.bf16.vlgmr.msra.gmra.mrb[60].mxu1 %vm57_vm0, %v1568_v39 }
 0x757   :  { %2396 = vmatprep.mubr.msk.f32.mxu0 %vm2645_vm1, %v2644_v0  ;;  %2403 = vmatprep.mubr.msk.f32.mxu1 %vm2645_vm1, %v2644_v0  ;;  %v2410_v0 = vpack.c.bf16 %v1779_v50, %v1778_v47 }
 0x758   :  { %2408 = vmatpush3.bf16.msra.mxu0 %v2407_v49  ;;  %2414 = vmatpush3.bf16.msra.mxu1 %v2413_v53 }
 0x759   :  { %2409 = vmatprep.subr.bf16.mxu0 %v2647_v48 }
 0x75c   :  { %2411 = vmatpush3.bf16.msra.mxu0 %v2410_v0 }
 0x821   :  { %v1606_v56 = vpop.f32.mrb[56].mxu0  ;;  %v1647_v57 = vpop.f32.mrb[56].mxu1 }
 0x822   :  { %v1612_v59 = vadd.f32 %v1606_v56, %v1564_v54  ;;  %v1653_v1 = vadd.f32 %v1647_v57, %v1565_v55  ;;  %v2362_v2 = vpop.f32.mrb[57].mxu0  ;;  %v2370_v7 = vpop.f32.mrb[57].mxu1 }
 0x823   :  { %v1609_v8 = vpop.f32.mrb[58].mxu0  ;;  %v1650_v9 = vpop.f32.mrb[58].mxu1 }
 0x824   :  { %v2021_v10 = vmul.f32 -1.442695, %v1612_v59  ;;  %v2022_v24 = vmul.f32 -1.442695, %v1653_v1  ;;  %v2363_v60 = vpop.f32.mrb[59].mxu0  ;;  %v2371_v61 = vpop.f32.mrb[59].mxu1 }
 0x826   :  { %2546 = vpow2.f32 %v2021_v10 }
 0x827   :  { %2548 = vpow2.f32 %v2022_v24 }
 0x829   :  { %v1688_v63 = vpop.f32.mrb[60].mxu0  ;;  %v1729_v5 = vpop.f32.mrb[60].mxu1 }
 0x82a   :  { %v1694_v6 = vadd.f32 %v1688_v63, %v1566_v62  ;;  %v2378_v3 = vpop.f32.mrb[61].mxu0  ;;  %v2386_v4 = vpop.f32.mrb[61].mxu1  ;;  %v1735_v17 = vadd.f32 %v1729_v5, %v1567_v11 }
 0x82b   :  { %v1691_v12 = vpop.f32.mrb[62].mxu0  ;;  %v1732_v13 = vpop.f32.mrb[62].mxu1 }
 0x82c   :  { %v2379_v14 = vpop.f32.mrb[63].mxu0  ;;  %v2387_v15 = vpop.f32.mrb[63].mxu1  ;;  %v2023_v16 = vmul.f32 -1.442695, %v1694_v6 }
 0x82e   :  { %2550 = vpow2.f32 %v2023_v16 }
 0x82f   :  { %2552 = vtanh.f32 %v1735_v17 }
 0x830   :  { %v2547_v18 = vpop.eup %2546 }
 0x831   :  { %v2549_v19 = vpop.eup %2548  ;;  %v1739_v20 = vadd.f32 1.0, %v2547_v18 }
 0x832   :  { %v1745_v21 = vadd.f32 1.0, %v2549_v19 }
 0x833   :  { %2554 = vrcp.f32 %v1739_v20 }
 0x834   :  { %2556 = vrcp.f32 %v1745_v21 }
 0x838   :  { %v2551_v22 = vpop.eup %2550 }
 0x839   :  { %v2553_v23 = vpop.eup %2552  ;;  %v1751_v26 = vadd.f32 1.0, %v2551_v22 }
 0x83b   :  { %2558 = vrcp.f32 %v1751_v26 }
 0x83d   :  { %v2555_v25 = vpop.eup %2554 }
 0x83e   :  { %v2557_v45 = vpop.eup %2556  ;;  %v1756_v27 = vmul.f32 %v2555_v25, %v2553_v23 }
 0x83f   :  { %v1755_v28 = vmul.f32 %v2557_v45, %v2992_v34  ;;  %v2024_v34 = vld [vmem:[%s3062_s3] ss:$0 sm:$0xff] }
 0x841   :  { %v1757_v29 = vadd.f32 %v1756_v27, %v1755_v28 }
 0x843   :  { %2560 = vtanh.f32 %v1757_v29  ;;  %1769 = vst.msk [vmem:[#allocation3] sm:$0xff] %vm57_vm0, %v1757_v29 }
 0x845   :  { %v2559_v30 = vpop.eup %2558 }
 0x84d   :  { %v2561_v31 = vpop.eup %2560 }
 0x84e   :  { %v1759_v32 = vmul.f32 %v2561_v31, %v2559_v30 }
 0x850   :  { %v1767_v33 = vmax.f32 %v1562_v38, %v1759_v32  ;;  %1768 = vst.msk [vmem:[#allocation2] sm:$0xff] %vm57_vm0, %v1759_v32 }
 0x852   :  { %1770 = vst.msk [vmem:[#allocation4] sm:$0xff] %vm57_vm0, %v1767_v33 }
 0x859   :  { %v1774_v35 = vld [vmem:[#allocation4] sm:$0xff] }
 0x85a   :  { %v1775_v36 = vmax.f32 %v1774_v35, 0.0 }
 0x85c   :  { %2397 = vmatmul.mubr.msk.f32.vlgmr.msra.gmra.mrb[64].mxu0 %vm57_vm0, %v1775_v36 }
 0x92f   :  { %v1856_v39 = vpop.f32.mrb[64].mxu0 }
 0x930   :  { %v1857_v40 = vadd.f32 %v2024_v34, %v1856_v39  ;;  %v2398_v41 = vpop.f32.mrb[65].mxu0 }
 0x932   :  { %2404 = vmatmul.mubr.msk.f32.vlgmr.msra.gmra.mrb[64].mxu1 %vm1869_vm2, %v1857_v40 }
 0xa05   :  { %v1939_v37 = vpop.f32.mrb[64].mxu1 }
 0xa06   :  { %v1940_v38 = vadd.f32 %v2026_v58, %v1939_v37  ;;  %v2405_v42 = vpop.f32.mrb[65].mxu1 }
 0xa08   :  { %1943 = vst [vmem:[#allocation10] sm:$0xff] %v1940_v38 }
 0xa09   :  { %2621 = shalt.err (!%p2618_p6)
}
 0xa0a   :  { %s2622_s17 = scalar_lea.hbm %s3065_s6, 128 }
 0xa0b   :  { %p2623_p7 = scmp.ne.s32.totalorder %s3065_s6, %s2622_s17  ;;  %p2626_p8 = scmp.lt.u32.totalorder %s2622_s17, %s3065_s6 }
 0xa0d   :  { %p2628_p9 = pnand %p2626_p8, %p2623_p7 }
 0xa0f   :  { %2631 = shalt.err (!%p2628_p9)
}
 0xa10   :  { %1953 = dma.vmem_to_hbm [thread:$0]  %s1951_s14, 128, %s3065_s6, [#allocation7]  }
 0xa11   :  { %2636 = dma.done.wait [#allocation7], 128  }
 0xa12   :  { %2637 = vsyncadd [#allocation7], 4294967168 }
 0xa13   :  { %1957 = vsyncpa [#allocation6], 1 }
 0xa14   :  { %1958 = vsyncpa [#allocation9], 1 }
 0xa15   :  { %1959 = vsyncpa [#allocation7], 1 }

</bundles_post_ra>
